<compile_context>
chip_gen: v7x
topology: tpu7x:2x2x1
jax: 0.10.0
libtpu: 0.0.40
codegen_flags: <defaults>
</compile_context>

<pallas_src>
import functools

import jax
import jax.numpy as jnp
from jax import lax
from jax.experimental import pallas as pl
from jax.experimental.pallas import tpu as pltpu

_BF16 = jnp.bfloat16


# ----------------------------------------------------------------------------
# Generation-aware VMEM budget / tile picking.
# ----------------------------------------------------------------------------
def _vmem_capacity_bytes():
    try:
        cap = getattr(pltpu.get_tpu_info(), "vmem_capacity_bytes", None)
        if cap:
            return int(cap)
    except Exception:
        pass
    return 64 * 1024 * 1024  # conservative fallback: v7x per-core VMEM


def _vmem_limit_bytes():
    # Leave headroom for Mosaic-internal scratch; never exceed physical VMEM.
    return min(int(_vmem_capacity_bytes() * 0.8), 112 * 1024 * 1024)


def _pick_tile(n, cap):
    """Largest divisor of n that is <= cap and a multiple of 8 (or n itself)."""
    t = max(1, min(n, int(cap)))
    while t > 1:
        if n % t == 0 and (t == n or t % 8 == 0):
            return t
        t -= 1
    return n


# ----------------------------------------------------------------------------
# Kernel A: fused Q|K|V projection of the un-gathered features (bf16 outputs).
# ----------------------------------------------------------------------------
def _qkv_proj_kernel(feats_ref, w_ref, q_ref, kv_ref):
    d = q_ref.shape[-1]
    res = jnp.dot(feats_ref[0].astype(_BF16), w_ref[...],
                  preferred_element_type=jnp.float32)        # [tn, 3d] f32 acc
    q_ref[0, :, :] = res[:, :d].astype(q_ref.dtype)
    kv_ref[0, :, :] = res[:, d:].astype(kv_ref.dtype)


# ----------------------------------------------------------------------------
# Kernel B: attention hot path + BN pass-1 epilogue for one (batch, n-tile).
# ----------------------------------------------------------------------------
def _attn_kernel(feats_ref, q_ref, kv_ref, delta_ref,
                 wd1_ref, w_ref, b_ref,
                 out_ref, stats_ref):
    feats = feats_ref[0]                                     # [tn, d] f32
    q = q_ref[0].astype(jnp.float32)                         # [tn, d]
    kv = kv_ref[0].astype(jnp.float32)                       # [tn, kk, 2d]
    tn, kk, d2 = kv.shape
    d = d2 // 2
    knn_k = kv[:, :, :d]                                     # [tn, kk, d]
    knn_v = kv[:, :, d:]                                     # [tn, kk, d]

    # fc_delta layer 1: K=3 contraction on the (idle at d<=128) MXU.
    h = (jnp.dot(delta_ref[0], wd1_ref[...],
                 preferred_element_type=jnp.float32)
         + b_ref[0:1])                                       # [tn*kk, d]
    h = jnp.maximum(h, 0.0)
    pos = (jnp.dot(h.astype(_BF16), w_ref[0],
                   preferred_element_type=jnp.float32)
           + b_ref[1:2])                                     # [tn*kk, d]
    pos3 = pos.reshape(tn, kk, d)

    # Value tensor (v + pos); computed early so intermediates die sooner.
    val = knn_v + pos3                                       # [tn, kk, d]

    # fc_gamma on (q - k + pos).
    pre = (q.reshape(tn, 1, d) - knn_k + pos3).reshape(tn * kk, d)
    g = jnp.maximum(
        jnp.dot(pre.astype(_BF16), w_ref[1],
                preferred_element_type=jnp.float32) + b_ref[2:3], 0.0)
    attn = (jnp.dot(g.astype(_BF16), w_ref[2],
                    preferred_element_type=jnp.float32)
            + b_ref[3:4]).reshape(tn, kk, d)

    # Softmax over the neighbour axis; denominator reciprocal goes to the EUP.
    attn = jnp.exp(attn - jnp.max(attn, axis=1, keepdims=True))
    inv = pl.reciprocal(jnp.sum(attn, axis=1, keepdims=True), approx=True)

    # einsum('bmnf,bmnf->bmf') + residual.
    res = jnp.sum((attn * inv) * val, axis=1) + feats        # [tn, d]
    out_ref[0, :, :] = res

    # BN pass-1 partials (sum / sum-of-squares) as an epilogue: saves a full
    # HBM re-read of the activations by a separate reduction kernel.
    stats_ref[0, 0, :, :] = jnp.concatenate(
        [jnp.sum(res, axis=0, keepdims=True),
         jnp.sum(res * res, axis=0, keepdims=True)], axis=0)


# ----------------------------------------------------------------------------
# Kernel C: BatchNorm apply (generic affine x*scale + shift, broadcastable).
# ----------------------------------------------------------------------------
def _bn_apply_kernel(x_ref, scale_ref, shift_ref, out_ref):
    out_ref[...] = x_ref[...] * scale_ref[...] + shift_ref[...]


# ----------------------------------------------------------------------------
# JAX glue (torch.no_grad section): KNN + gathers, plus tiny per-channel math.
# ----------------------------------------------------------------------------
def _index_points(points, idx):
    # points [b, n, c], idx [b, m, k] -> [b, m, k, c]
    return jax.vmap(lambda p, i: p[i])(points, idx)


def _knn_indices(xyz, k):
    # matmul-form squared distances + top_k (no [b,n,n,3] broadcast, no argsort)
    sq = jnp.sum(xyz * xyz, axis=-1)
    d2 = sq[:, :, None] - 2.0 * jnp.einsum('bic,bjc->bij', xyz, xyz) + sq[:, None, :]
    _, idx = lax.top_k(-d2, k)
    return idx


@functools.partial(jax.jit, static_argnames=("k", "group_all"))
def transformer_block(xyz, feats, params, *, k, group_all=False):
    b, n, _ = xyz.shape
    d = feats.shape[-1]
    (wq, wk, wv, wd1, bd1, wd2, bd2, wg1, bg1, wg2, bg2, bn_g, bn_b) = params

    vmem_limit = _vmem_limit_bytes()
    budget = int(vmem_limit * 0.6)

    def cparams(ds):
        return pltpu.CompilerParams(dimension_semantics=ds,
                                    vmem_limit_bytes=vmem_limit)

    # --- no_grad glue: neighbour indices ---
    if group_all:
        # TODO(synk): group_all materializes O(b*n^2*d) gathers; restructure as a
        # flash-style loop over the key axis for large n.
        knn_idx = jnp.broadcast_to(jnp.arange(n, dtype=jnp.int32)[None, None, :],
                                   (b, n, n))
        kk = n
    else:
        knn_idx = _knn_indices(xyz, k)
        kk = k
    # NOTE: a kk that is not a multiple of 8 makes the in-kernel
    # (tn*kk,d)<->(tn,kk,d) reshapes materialize VMEM copies.

    knn_xyz = _index_points(xyz, knn_idx)                    # [b, n, kk, 3]
    delta_flat = (xyz[:, :, None, :] - knn_xyz).astype(_BF16).reshape(b, n * kk, 3)

    # --- VMEM-aware tile sizes ---------------------------------------------
    # Kernel B per-row bytes: double-buffered inputs/outputs (delta lane-padded
    # to 128) plus the live f32 [kk, d] intermediates.
    bytes_per_row = (2 * (4 * d + 2 * d + 2 * 2 * kk * d + 2 * kk * 128)
                     + 2 * 4 * d
                     + 9 * 4 * kk * d)
    tn = _pick_tile(n, max(8, budget // max(1, bytes_per_row)))
    if b * (n // tn) < 2 and n >= 16:   # keep both v7x TensorCores busy
        tn = _pick_tile(n, max(8, n // 2))
    grid_b = (b, n // tn)

    tn_a = _pick_tile(n, max(tn, min(2048, budget // max(1, 24 * d))))
    grid_a = (b, n // tn_a)

    # --- Kernel A: fused Q|K|V projection (bf16), then one combined gather ---
    w_qkv = jnp.concatenate([wq, wk, wv], axis=1).astype(_BF16)     # [d, 3d]
    q_proj, kv_proj = pl.pallas_call(
        _qkv_proj_kernel,
        out_shape=(jax.ShapeDtypeStruct((b, n, d), _BF16),
                   jax.ShapeDtypeStruct((b, n, 2 * d), _BF16)),
        grid=grid_a,
        in_specs=[pl.BlockSpec((1, tn_a, d), lambda i, j: (i, j, 0)),
                  pl.BlockSpec((d, 3 * d), lambda i, j: (0, 0))],
        out_specs=[pl.BlockSpec((1, tn_a, d), lambda i, j: (i, j, 0)),
                   pl.BlockSpec((1, tn_a, 2 * d), lambda i, j: (i, j, 0))],
        compiler_params=cparams(("parallel", "parallel")),
    )(feats, w_qkv)

    knn_kv = _index_points(kv_proj, knn_idx)                 # [b, n, kk, 2d] bf16

    # --- Kernel B: attention + residual + BN-stats epilogue ------------------
    w_stack = jnp.stack([wd2, wg1, wg2], axis=0).astype(_BF16)      # [3, d, d]
    b_stack = jnp.concatenate([bd1, bd2, bg1, bg2], axis=0)         # [4, d] f32
    wd1_bf = wd1.astype(_BF16)                                      # [3, d]

    attn_res, stats_part = pl.pallas_call(
        _attn_kernel,
        out_shape=(jax.ShapeDtypeStruct((b, n, d), jnp.float32),
                   jax.ShapeDtypeStruct((b, n // tn, 2, d), jnp.float32)),
        grid=grid_b,
        in_specs=[
            pl.BlockSpec((1, tn, d), lambda i, j: (i, j, 0)),            # feats
            pl.BlockSpec((1, tn, d), lambda i, j: (i, j, 0)),            # q (bf16)
            pl.BlockSpec((1, tn, kk, 2 * d), lambda i, j: (i, j, 0, 0)), # k|v (bf16)
            pl.BlockSpec((1, tn * kk, 3), lambda i, j: (i, j, 0)),       # delta (bf16)
            pl.BlockSpec((3, d), lambda i, j: (0, 0)),                   # fc_delta W1
            pl.BlockSpec((3, d, d), lambda i, j: (0, 0, 0)),             # wd2|wg1|wg2
            pl.BlockSpec((4, d), lambda i, j: (0, 0)),                   # bias slab
        ],
        out_specs=[pl.BlockSpec((1, tn, d), lambda i, j: (i, j, 0)),
                   pl.BlockSpec((1, 1, 2, d), lambda i, j: (i, j, 0, 0))],
        compiler_params=cparams(("parallel", "parallel")),
    )(feats, q_proj, knn_kv, delta_flat, wd1_bf, w_stack, b_stack)

    # --- tiny per-channel BN math in XLA (per-tile partials already reduced) ---
    rows = b * n
    stats = jnp.sum(stats_part, axis=(0, 1))                 # [2, d]
    mean = stats[0] / rows
    var = stats[1] / rows - mean * mean                      # biased variance
    inv = lax.rsqrt(var + 1e-5)
    gamma = bn_g.reshape(-1)
    beta = bn_b.reshape(-1)
    scale = gamma * inv
    shift = beta - gamma * inv * mean
    # TODO(synk): running-mean/var buffer updates (torch eval-mode BN) not modeled.

    # --- Kernel C: BN apply; lane-dense (rows*d/128, 128) layout when legal ---
    if (rows * d) % 128 == 0 and 128 % d == 0:
        rows2 = rows * d // 128
        rep = 128 // d
        flat = attn_res.reshape(rows2, 128)
        scale_in = jnp.tile(scale, rep).reshape(1, 128)
        shift_in = jnp.tile(shift, rep).reshape(1, 128)
        tr = _pick_tile(rows2, min(2048, max(8, budget // 2048)))
        out = pl.pallas_call(
            _bn_apply_kernel,
            out_shape=jax.ShapeDtypeStruct((rows2, 128), jnp.float32),
            grid=(rows2 // tr,),
            in_specs=[pl.BlockSpec((tr, 128), lambda i: (i, 0)),
                      pl.BlockSpec((1, 128), lambda i: (0, 0)),
                      pl.BlockSpec((1, 128), lambda i: (0, 0))],
            out_specs=pl.BlockSpec((tr, 128), lambda i: (i, 0)),
            compiler_params=cparams(("parallel",)),
        )(flat, scale_in, shift_in).reshape(b, n, d)
    else:
        out = pl.pallas_call(
            _bn_apply_kernel,
            out_shape=jax.ShapeDtypeStruct((b, n, d), jnp.float32),
            grid=grid_b,
            in_specs=[pl.BlockSpec((1, tn, d), lambda i, j: (i, j, 0)),
                      pl.BlockSpec((1, 1, d), lambda i, j: (0, 0, 0)),
                      pl.BlockSpec((1, 1, d), lambda i, j: (0, 0, 0))],
            out_specs=pl.BlockSpec((1, tn, d), lambda i, j: (i, j, 0)),
            compiler_params=cparams(("parallel", "parallel")),
        )(attn_res, scale.reshape(1, 1, d), shift.reshape(1, 1, d))

    return out


# ----------------------------------------------------------------------------
# Pure-JAX reference (mirrors the bf16 matmul/storage casts to keep it tight).
# ----------------------------------------------------------------------------
def reference(xyz, feats, params, *, k):
    (wq, wk, wv, wd1, bd1, wd2, bd2, wg1, bg1, wg2, bg2, bn_g, bn_b) = params

    def bdot(a, w):
        return jnp.dot(a.astype(_BF16), w.astype(_BF16),
                       preferred_element_type=jnp.float32)

    knn_idx = _knn_indices(xyz, k)
    knn_xyz = _index_points(xyz, knn_idx)
    q = bdot(feats, wq).astype(_BF16).astype(jnp.float32)
    k_attn = _index_points(bdot(feats, wk).astype(_BF16), knn_idx).astype(jnp.float32)
    v_attn = _index_points(bdot(feats, wv).astype(_BF16), knn_idx).astype(jnp.float32)
    delta = xyz[:, :, None, :] - knn_xyz
    h = jnp.maximum(bdot(delta, wd1) + bd1[0], 0.0)
    pos = bdot(h, wd2) + bd2[0]
    pre = q[:, :, None, :] - k_attn + pos
    g = jnp.maximum(bdot(pre, wg1) + bg1[0], 0.0)
    attn = bdot(g, wg2) + bg2[0]
    attn = jax.nn.softmax(attn, axis=-2)
    res = jnp.einsum('bmnf,bmnf->bmf', attn, v_attn + pos) + feats
    mean = jnp.mean(res, axis=(0, 1), keepdims=True)
    var = jnp.mean((res - mean) ** 2, axis=(0, 1), keepdims=True)
    return (bn_g.reshape(1, 1, -1) * (res - mean) * lax.rsqrt(var + 1e-5)
            + bn_b.reshape(1, 1, -1))


if __name__ == "__main__":
    b, n, d, k = 2, 16, 32, 8

    key = jax.random.PRNGKey(0)
    k_xyz, k_feat, *k_w = jax.random.split(key, 13)

    xyz = jax.random.normal(k_xyz, (b, n, 3), dtype=jnp.float32)
    feats = jax.random.normal(k_feat, (b, n, d), dtype=jnp.float32)

    s = 0.1
    params = (
        s * jax.random.normal(k_w[0], (d, d), jnp.float32),   # w_qs
        s * jax.random.normal(k_w[1], (d, d), jnp.float32),   # w_ks
        s * jax.random.normal(k_w[2], (d, d), jnp.float32),   # w_vs
        s * jax.random.normal(k_w[3], (3, d), jnp.float32),   # fc_delta W1
        s * jax.random.normal(k_w[4], (1, d), jnp.float32),   # fc_delta b1
        s * jax.random.normal(k_w[5], (d, d), jnp.float32),   # fc_delta W2
        s * jax.random.normal(k_w[6], (1, d), jnp.float32),   # fc_delta b2
        s * jax.random.normal(k_w[7], (d, d), jnp.float32),   # fc_gamma W1
        s * jax.random.normal(k_w[8], (1, d), jnp.float32),   # fc_gamma b1
        s * jax.random.normal(k_w[9], (d, d), jnp.float32),   # fc_gamma W2
        s * jax.random.normal(k_w[10], (1, d), jnp.float32),  # fc_gamma b2
        jnp.ones((1, 1, d), jnp.float32),                     # BN gamma
        jnp.zeros((1, 1, d), jnp.float32),                    # BN beta
    )

    out = transformer_block(xyz, feats, params, k=k, group_all=False)
    out = jax.block_until_ready(out)

    ref = reference(xyz, feats, params, k=k)
    # Tolerance accounts for bf16 MXU operands / bf16 K|V storage + EUP approx
    # reciprocal in the kernel path (structural bugs would show as O(1) errors).
    if not jnp.allclose(out, ref, atol=2e-2, rtol=2e-2):
        err = float(jnp.max(jnp.abs(out - ref)))
        raise AssertionError(f"Pallas kernel output mismatch vs reference (max abs err {err})")

    print("KERNEL_OK")
</pallas_src>

<mosaic_0001>
module attributes {stable_mosaic.version = 11 : i64} {
  func.func @_qkv_proj_kernel(%arg0: i32, %arg1: i32, %arg2: memref<1x16x32xf32, #tpu.memory_space<vmem>>, %arg3: memref<32x96xbf16, #tpu.memory_space<vmem>>, %arg4: memref<1x16x32xbf16, #tpu.memory_space<vmem>>, %arg5: memref<1x16x64xbf16, #tpu.memory_space<vmem>>) attributes {dimension_semantics = [#tpu.dimension_semantics<parallel>, #tpu.dimension_semantics<parallel>], iteration_bounds = array<i64: 2, 1>, scalar_prefetch = 0 : i64, scratch_operands = 0 : i64, tpu.core_type = #tpu.core_type<tc>, window_params = [{transform_indices = @transform_0, window_bounds = array<i64: 1, 16, 32>}, {pipeline_mode = #tpu.pipeline_mode<synchronous>, transform_indices = @transform_1, window_bounds = array<i64: 32, 96>}, {transform_indices = @transform_2, window_bounds = array<i64: 1, 16, 32>}, {transform_indices = @transform_3, window_bounds = array<i64: 1, 16, 64>}]} {
    %c0 = arith.constant 0 : index
    %c0_0 = arith.constant 0 : index
    %c0_1 = arith.constant 0 : index
    %0 = vector.load %arg2[%c0, %c0_0, %c0_1] : memref<1x16x32xf32, #tpu.memory_space<vmem>>, vector<1x16x32xf32>
    %1 = vector.shape_cast %0 : vector<1x16x32xf32> to vector<16x32xf32>
    %2 = arith.truncf %1 : vector<16x32xf32> to vector<16x32xbf16>
    %c0_2 = arith.constant 0 : index
    %c0_3 = arith.constant 0 : index
    %3 = vector.load %arg3[%c0_2, %c0_3] : memref<32x96xbf16, #tpu.memory_space<vmem>>, vector<32x96xbf16>
    %cst = arith.constant dense<0.000000e+00> : vector<16x96xf32>
    %4 = tpu.matmul %2, %3, %cst {dimension_numbers = #tpu.dot_dimension_numbers<[1], [0], [0], [1], [0, 0, 1, 1], [], []>} : vector<16x32xbf16>, vector<32x96xbf16>, vector<16x96xf32> -> vector<16x96xf32>
    %5 = vector.extract_strided_slice %4 {offsets = [0, 0], sizes = [16, 32], strides = [1, 1]} : vector<16x96xf32> to vector<16x32xf32>
    %6 = arith.truncf %5 : vector<16x32xf32> to vector<16x32xbf16>
    %c0_4 = arith.constant 0 : index
    %c0_5 = arith.constant 0 : index
    %c0_6 = arith.constant 0 : index
    %7 = vector.load %arg4[%c0_4, %c0_5, %c0_6] : memref<1x16x32xbf16, #tpu.memory_space<vmem>>, vector<1x16x32xbf16>
    %8 = vector.shape_cast %7 : vector<1x16x32xbf16> to vector<16x32xbf16>
    %9 = vector.shape_cast %6 : vector<16x32xbf16> to vector<1x16x32xbf16>
    tpu.vector_store %arg4[%c0_4, %c0_5, %c0_6], %9 {strides = array<i32>} : memref<1x16x32xbf16, #tpu.memory_space<vmem>>, vector<1x16x32xbf16>,
    %10 = vector.extract_strided_slice %4 {offsets = [0, 32], sizes = [16, 64], strides = [1, 1]} : vector<16x96xf32> to vector<16x64xf32>
    %11 = arith.truncf %10 : vector<16x64xf32> to vector<16x64xbf16>
    %c0_7 = arith.constant 0 : index
    %c0_8 = arith.constant 0 : index
    %c0_9 = arith.constant 0 : index
    %12 = vector.load %arg5[%c0_7, %c0_8, %c0_9] : memref<1x16x64xbf16, #tpu.memory_space<vmem>>, vector<1x16x64xbf16>
    %13 = vector.shape_cast %12 : vector<1x16x64xbf16> to vector<16x64xbf16>
    %14 = vector.shape_cast %11 : vector<16x64xbf16> to vector<1x16x64xbf16>
    tpu.vector_store %arg5[%c0_7, %c0_8, %c0_9], %14 {strides = array<i32>} : memref<1x16x64xbf16, #tpu.memory_space<vmem>>, vector<1x16x64xbf16>,
    return
  }
  func.func @transform_0(%arg0: i32, %arg1: i32) -> (i32, i32, i32) {
    %c0_i32 = arith.constant 0 : i32
    %c0_i32_0 = arith.constant 0 : i32
    return %arg0, %arg1, %c0_i32 : i32, i32, i32
  }
  func.func @transform_1(%arg0: i32, %arg1: i32) -> (i32, i32) {
    %c0_i32 = arith.constant 0 : i32
    %c0_i32_0 = arith.constant 0 : i32
    %c0_i32_1 = arith.constant 0 : i32
    return %c0_i32, %c0_i32_0 : i32, i32
  }
  func.func @transform_2(%arg0: i32, %arg1: i32) -> (i32, i32, i32) {
    %c0_i32 = arith.constant 0 : i32
    %c0_i32_0 = arith.constant 0 : i32
    return %arg0, %arg1, %c0_i32 : i32, i32, i32
  }
  func.func @transform_3(%arg0: i32, %arg1: i32) -> (i32, i32, i32) {
    %c0_i32 = arith.constant 0 : i32
    %c0_i32_0 = arith.constant 0 : i32
    return %arg0, %arg1, %c0_i32 : i32, i32, i32
  }
}

module attributes {stable_mosaic.version = 11 : i64} {
  func.func @_attn_kernel(%arg0: i32, %arg1: i32, %arg2: memref<1x16x32xf32, #tpu.memory_space<vmem>>, %arg3: memref<1x16x32xbf16, #tpu.memory_space<vmem>>, %arg4: memref<1x16x8x64xbf16, #tpu.memory_space<vmem>>, %arg5: memref<1x128x3xbf16, #tpu.memory_space<vmem>>, %arg6: memref<3x32xbf16, #tpu.memory_space<vmem>>, %arg7: memref<3x32x32xbf16, #tpu.memory_space<vmem>>, %arg8: memref<4x32xf32, #tpu.memory_space<vmem>>, %arg9: memref<1x16x32xf32, #tpu.memory_space<vmem>>, %arg10: memref<1x1x2x32xf32, #tpu.memory_space<vmem>>) attributes {dimension_semantics = [#tpu.dimension_semantics<parallel>, #tpu.dimension_semantics<parallel>], iteration_bounds = array<i64: 2, 1>, scalar_prefetch = 0 : i64, scratch_operands = 0 : i64, tpu.core_type = #tpu.core_type<tc>, window_params = [{transform_indices = @transform_0, window_bounds = array<i64: 1, 16, 32>}, {transform_indices = @transform_1, window_bounds = array<i64: 1, 16, 32>}, {transform_indices = @transform_2, window_bounds = array<i64: 1, 16, 8, 64>}, {transform_indices = @transform_3, window_bounds = array<i64: 1, 128, 3>}, {pipeline_mode = #tpu.pipeline_mode<synchronous>, transform_indices = @transform_4, window_bounds = array<i64: 3, 32>}, {pipeline_mode = #tpu.pipeline_mode<synchronous>, transform_indices = @transform_5, window_bounds = array<i64: 3, 32, 32>}, {pipeline_mode = #tpu.pipeline_mode<synchronous>, transform_indices = @transform_6, window_bounds = array<i64: 4, 32>}, {transform_indices = @transform_7, window_bounds = array<i64: 1, 16, 32>}, {transform_indices = @transform_8, window_bounds = array<i64: 1, 1, 2, 32>}]} {
    %c0 = arith.constant 0 : index
    %c0_0 = arith.constant 0 : index
    %c0_1 = arith.constant 0 : index
    %0 = vector.load %arg2[%c0, %c0_0, %c0_1] : memref<1x16x32xf32, #tpu.memory_space<vmem>>, vector<1x16x32xf32>
    %1 = vector.shape_cast %0 : vector<1x16x32xf32> to vector<16x32xf32>
    %c0_2 = arith.constant 0 : index
    %c0_3 = arith.constant 0 : index
    %c0_4 = arith.constant 0 : index
    %2 = vector.load %arg3[%c0_2, %c0_3, %c0_4] : memref<1x16x32xbf16, #tpu.memory_space<vmem>>, vector<1x16x32xbf16>
    %3 = vector.shape_cast %2 : vector<1x16x32xbf16> to vector<16x32xbf16>
    %4 = arith.extf %3 : vector<16x32xbf16> to vector<16x32xf32>
    %c0_5 = arith.constant 0 : index
    %c0_6 = arith.constant 0 : index
    %c0_7 = arith.constant 0 : index
    %c0_8 = arith.constant 0 : index
    %5 = vector.load %arg4[%c0_5, %c0_6, %c0_7, %c0_8] : memref<1x16x8x64xbf16, #tpu.memory_space<vmem>>, vector<1x16x8x64xbf16>
    %6 = vector.shape_cast %5 : vector<1x16x8x64xbf16> to vector<16x8x64xbf16>
    %7 = arith.extf %6 : vector<16x8x64xbf16> to vector<16x8x64xf32>
    %8 = vector.extract_strided_slice %7 {offsets = [0, 0, 0], sizes = [16, 8, 32], strides = [1, 1, 1]} : vector<16x8x64xf32> to vector<16x8x32xf32>
    %9 = vector.extract_strided_slice %7 {offsets = [0, 0, 32], sizes = [16, 8, 32], strides = [1, 1, 1]} : vector<16x8x64xf32> to vector<16x8x32xf32>
    %c0_9 = arith.constant 0 : index
    %c0_10 = arith.constant 0 : index
    %c0_11 = arith.constant 0 : index
    %10 = vector.load %arg5[%c0_9, %c0_10, %c0_11] : memref<1x128x3xbf16, #tpu.memory_space<vmem>>, vector<1x128x3xbf16>
    %11 = vector.shape_cast %10 : vector<1x128x3xbf16> to vector<128x3xbf16>
    %c0_12 = arith.constant 0 : index
    %c0_13 = arith.constant 0 : index
    %12 = vector.load %arg6[%c0_12, %c0_13] : memref<3x32xbf16, #tpu.memory_space<vmem>>, vector<3x32xbf16>
    %cst = arith.constant dense<0.000000e+00> : vector<128x32xf32>
    %13 = tpu.matmul %11, %12, %cst {dimension_numbers = #tpu.dot_dimension_numbers<[1], [0], [0], [1], [0, 0, 1, 1], [], []>} : vector<128x3xbf16>, vector<3x32xbf16>, vector<128x32xf32> -> vector<128x32xf32>
    %c0_14 = arith.constant 0 : index
    %c0_15 = arith.constant 0 : index
    %14 = vector.load %arg8[%c0_14, %c0_15] : memref<4x32xf32, #tpu.memory_space<vmem>>, vector<1x32xf32>
    %15 = vector.broadcast %14 : vector<1x32xf32> to vector<128x32xf32>
    %16 = arith.addf %13, %15 : vector<128x32xf32>
    %cst_16 = arith.constant 0.000000e+00 : f32
    %17 = vector.broadcast %cst_16 : f32 to vector<128x32xf32>
    %18 = arith.maximumf %16, %17 : vector<128x32xf32>
    %19 = arith.truncf %18 : vector<128x32xf32> to vector<128x32xbf16>
    %c0_17 = arith.constant 0 : index
    %c0_18 = arith.constant 0 : index
    %c0_19 = arith.constant 0 : index
    %20 = vector.load %arg7[%c0_17, %c0_18, %c0_19] : memref<3x32x32xbf16, #tpu.memory_space<vmem>>, vector<1x32x32xbf16>
    %21 = vector.shape_cast %20 : vector<1x32x32xbf16> to vector<32x32xbf16>
    %cst_20 = arith.constant dense<0.000000e+00> : vector<128x32xf32>
    %22 = tpu.matmul %19, %21, %cst_20 {dimension_numbers = #tpu.dot_dimension_numbers<[1], [0], [0], [1], [0, 0, 1, 1], [], []>} : vector<128x32xbf16>, vector<32x32xbf16>, vector<128x32xf32> -> vector<128x32xf32>
    %c1 = arith.constant 1 : index
    %c0_21 = arith.constant 0 : index
    %23 = vector.load %arg8[%c1, %c0_21] : memref<4x32xf32, #tpu.memory_space<vmem>>, vector<1x32xf32>
    %24 = vector.broadcast %23 : vector<1x32xf32> to vector<128x32xf32>
    %25 = arith.addf %22, %24 : vector<128x32xf32>
    %26 = vector.shape_cast %25 : vector<128x32xf32> to vector<16x8x32xf32>
    %27 = arith.addf %9, %26 : vector<16x8x32xf32>
    %28 = vector.shape_cast %4 : vector<16x32xf32> to vector<16x1x32xf32>
    %29 = vector.broadcast %28 : vector<16x1x32xf32> to vector<16x8x32xf32>
    %30 = arith.subf %29, %8 : vector<16x8x32xf32>
    %31 = arith.addf %30, %26 : vector<16x8x32xf32>
    %32 = vector.shape_cast %31 : vector<16x8x32xf32> to vector<128x32xf32>
    %33 = arith.truncf %32 : vector<128x32xf32> to vector<128x32xbf16>
    %c1_22 = arith.constant 1 : index
    %c0_23 = arith.constant 0 : index
    %c0_24 = arith.constant 0 : index
    %34 = vector.load %arg7[%c1_22, %c0_23, %c0_24] : memref<3x32x32xbf16, #tpu.memory_space<vmem>>, vector<1x32x32xbf16>
    %35 = vector.shape_cast %34 : vector<1x32x32xbf16> to vector<32x32xbf16>
    %cst_25 = arith.constant dense<0.000000e+00> : vector<128x32xf32>
    %36 = tpu.matmul %33, %35, %cst_25 {dimension_numbers = #tpu.dot_dimension_numbers<[1], [0], [0], [1], [0, 0, 1, 1], [], []>} : vector<128x32xbf16>, vector<32x32xbf16>, vector<128x32xf32> -> vector<128x32xf32>
    %c2 = arith.constant 2 : index
    %c0_26 = arith.constant 0 : index
    %37 = vector.load %arg8[%c2, %c0_26] : memref<4x32xf32, #tpu.memory_space<vmem>>, vector<1x32xf32>
    %38 = vector.broadcast %37 : vector<1x32xf32> to vector<128x32xf32>
    %39 = arith.addf %36, %38 : vector<128x32xf32>
    %cst_27 = arith.constant 0.000000e+00 : f32
    %40 = vector.broadcast %cst_27 : f32 to vector<128x32xf32>
    %41 = arith.maximumf %39, %40 : vector<128x32xf32>
    %42 = arith.truncf %41 : vector<128x32xf32> to vector<128x32xbf16>
    %c2_28 = arith.constant 2 : index
    %c0_29 = arith.constant 0 : index
    %c0_30 = arith.constant 0 : index
    %43 = vector.load %arg7[%c2_28, %c0_29, %c0_30] : memref<3x32x32xbf16, #tpu.memory_space<vmem>>, vector<1x32x32xbf16>
    %44 = vector.shape_cast %43 : vector<1x32x32xbf16> to vector<32x32xbf16>
    %cst_31 = arith.constant dense<0.000000e+00> : vector<128x32xf32>
    %45 = tpu.matmul %42, %44, %cst_31 {dimension_numbers = #tpu.dot_dimension_numbers<[1], [0], [0], [1], [0, 0, 1, 1], [], []>} : vector<128x32xbf16>, vector<32x32xbf16>, vector<128x32xf32> -> vector<128x32xf32>
    %c3 = arith.constant 3 : index
    %c0_32 = arith.constant 0 : index
    %46 = vector.load %arg8[%c3, %c0_32] : memref<4x32xf32, #tpu.memory_space<vmem>>, vector<1x32xf32>
    %47 = vector.broadcast %46 : vector<1x32xf32> to vector<128x32xf32>
    %48 = arith.addf %45, %47 : vector<128x32xf32>
    %49 = vector.shape_cast %48 : vector<128x32xf32> to vector<16x8x32xf32>
    %cst_33 = arith.constant dense<0xFF800000> : vector<16x32xf32>
    %50 = vector.multi_reduction <maximumf>, %49, %cst_33 [1] : vector<16x8x32xf32> to vector<16x32xf32>
    %51 = vector.shape_cast %50 : vector<16x32xf32> to vector<16x1x32xf32>
    %52 = vector.broadcast %51 : vector<16x1x32xf32> to vector<16x8x32xf32>
    %53 = arith.subf %49, %52 : vector<16x8x32xf32>
    %54 = math.exp %53 : vector<16x8x32xf32>
    %cst_34 = arith.constant dense<0.000000e+00> : vector<16x32xf32>
    %55 = vector.multi_reduction <add>, %54, %cst_34 [1] : vector<16x8x32xf32> to vector<16x32xf32>
    %56 = vector.shape_cast %55 : vector<16x32xf32> to vector<16x1x32xf32>
    %57 = tpu.reciprocal %56 {approx = true} : vector<16x1x32xf32> -> vector<16x1x32xf32>
    %58 = vector.broadcast %57 : vector<16x1x32xf32> to vector<16x8x32xf32>
    %59 = arith.mulf %54, %58 : vector<16x8x32xf32>
    %60 = arith.mulf %59, %27 : vector<16x8x32xf32>
    %cst_35 = arith.constant dense<0.000000e+00> : vector<16x32xf32>
    %61 = vector.multi_reduction <add>, %60, %cst_35 [1] : vector<16x8x32xf32> to vector<16x32xf32>
    %62 = arith.addf %61, %1 : vector<16x32xf32>
    %c0_36 = arith.constant 0 : index
    %c0_37 = arith.constant 0 : index
    %c0_38 = arith.constant 0 : index
    %63 = vector.load %arg9[%c0_36, %c0_37, %c0_38] : memref<1x16x32xf32, #tpu.memory_space<vmem>>, vector<1x16x32xf32>
    %64 = vector.shape_cast %63 : vector<1x16x32xf32> to vector<16x32xf32>
    %65 = vector.shape_cast %62 : vector<16x32xf32> to vector<1x16x32xf32>
    tpu.vector_store %arg9[%c0_36, %c0_37, %c0_38], %65 {strides = array<i32>} : memref<1x16x32xf32, #tpu.memory_space<vmem>>, vector<1x16x32xf32>,
    %cst_39 = arith.constant dense<0.000000e+00> : vector<32xf32>
    %66 = vector.multi_reduction <add>, %62, %cst_39 [0] : vector<16x32xf32> to vector<32xf32>
    %67 = vector.shape_cast %66 : vector<32xf32> to vector<1x32xf32>
    %68 = arith.mulf %62, %62 : vector<16x32xf32>
    %cst_40 = arith.constant dense<0.000000e+00> : vector<32xf32>
    %69 = vector.multi_reduction <add>, %68, %cst_40 [0] : vector<16x32xf32> to vector<32xf32>
    %70 = vector.shape_cast %69 : vector<32xf32> to vector<1x32xf32>
    %71 = tpu.concatenate %67, %70 in 0 : vector<1x32xf32>, vector<1x32xf32> -> vector<2x32xf32>
    %c0_41 = arith.constant 0 : index
    %c0_42 = arith.constant 0 : index
    %c0_43 = arith.constant 0 : index
    %c0_44 = arith.constant 0 : index
    %72 = vector.load %arg10[%c0_41, %c0_42, %c0_43, %c0_44] : memref<1x1x2x32xf32, #tpu.memory_space<vmem>>, vector<1x1x2x32xf32>
    %73 = vector.shape_cast %72 : vector<1x1x2x32xf32> to vector<2x32xf32>
    %74 = vector.shape_cast %71 : vector<2x32xf32> to vector<1x1x2x32xf32>
    tpu.vector_store %arg10[%c0_41, %c0_42, %c0_43, %c0_44], %74 {strides = array<i32>} : memref<1x1x2x32xf32, #tpu.memory_space<vmem>>, vector<1x1x2x32xf32>,
    return
  }
  func.func @transform_0(%arg0: i32, %arg1: i32) -> (i32, i32, i32) {
    %c0_i32 = arith.constant 0 : i32
    %c0_i32_0 = arith.constant 0 : i32
    return %arg0, %arg1, %c0_i32 : i32, i32, i32
  }
  func.func @transform_1(%arg0: i32, %arg1: i32) -> (i32, i32, i32) {
    %c0_i32 = arith.constant 0 : i32
    %c0_i32_0 = arith.constant 0 : i32
    return %arg0, %arg1, %c0_i32 : i32, i32, i32
  }
  func.func @transform_2(%arg0: i32, %arg1: i32) -> (i32, i32, i32, i32) {
    %c0_i32 = arith.constant 0 : i32
    %c0_i32_0 = arith.constant 0 : i32
    %c0_i32_1 = arith.constant 0 : i32
    return %arg0, %arg1, %c0_i32, %c0_i32_0 : i32, i32, i32, i32
  }
  func.func @transform_3(%arg0: i32, %arg1: i32) -> (i32, i32, i32) {
    %c0_i32 = arith.constant 0 : i32
    %c0_i32_0 = arith.constant 0 : i32
    return %arg0, %arg1, %c0_i32 : i32, i32, i32
  }
  func.func @transform_4(%arg0: i32, %arg1: i32) -> (i32, i32) {
    %c0_i32 = arith.constant 0 : i32
    %c0_i32_0 = arith.constant 0 : i32
    %c0_i32_1 = arith.constant 0 : i32
    return %c0_i32, %c0_i32_0 : i32, i32
  }
  func.func @transform_5(%arg0: i32, %arg1: i32) -> (i32, i32, i32) {
    %c0_i32 = arith.constant 0 : i32
    %c0_i32_0 = arith.constant 0 : i32
    %c0_i32_1 = arith.constant 0 : i32
    %c0_i32_2 = arith.constant 0 : i32
    return %c0_i32, %c0_i32_0, %c0_i32_1 : i32, i32, i32
  }
  func.func @transform_6(%arg0: i32, %arg1: i32) -> (i32, i32) {
    %c0_i32 = arith.constant 0 : i32
    %c0_i32_0 = arith.constant 0 : i32
    %c0_i32_1 = arith.constant 0 : i32
    return %c0_i32, %c0_i32_0 : i32, i32
  }
  func.func @transform_7(%arg0: i32, %arg1: i32) -> (i32, i32, i32) {
    %c0_i32 = arith.constant 0 : i32
    %c0_i32_0 = arith.constant 0 : i32
    return %arg0, %arg1, %c0_i32 : i32, i32, i32
  }
  func.func @transform_8(%arg0: i32, %arg1: i32) -> (i32, i32, i32, i32) {
    %c0_i32 = arith.constant 0 : i32
    %c0_i32_0 = arith.constant 0 : i32
    %c0_i32_1 = arith.constant 0 : i32
    return %arg0, %arg1, %c0_i32, %c0_i32_0 : i32, i32, i32, i32
  }
}

module attributes {stable_mosaic.version = 11 : i64} {
  func.func @_bn_apply_kernel(%arg0: i32, %arg1: memref<8x128xf32, #tpu.memory_space<vmem>>, %arg2: memref<1x128xf32, #tpu.memory_space<vmem>>, %arg3: memref<1x128xf32, #tpu.memory_space<vmem>>, %arg4: memref<8x128xf32, #tpu.memory_space<vmem>>) attributes {dimension_semantics = [#tpu.dimension_semantics<parallel>], iteration_bounds = array<i64: 1>, scalar_prefetch = 0 : i64, scratch_operands = 0 : i64, tpu.core_type = #tpu.core_type<tc>, window_params = [{transform_indices = @transform_0, window_bounds = array<i64: 8, 128>}, {pipeline_mode = #tpu.pipeline_mode<synchronous>, transform_indices = @transform_1, window_bounds = array<i64: 1, 128>}, {pipeline_mode = #tpu.pipeline_mode<synchronous>, transform_indices = @transform_2, window_bounds = array<i64: 1, 128>}, {transform_indices = @transform_3, window_bounds = array<i64: 8, 128>}]} {
    %c0 = arith.constant 0 : index
    %c0_0 = arith.constant 0 : index
    %0 = vector.load %arg1[%c0, %c0_0] : memref<8x128xf32, #tpu.memory_space<vmem>>, vector<8x128xf32>
    %c0_1 = arith.constant 0 : index
    %c0_2 = arith.constant 0 : index
    %1 = vector.load %arg2[%c0_1, %c0_2] : memref<1x128xf32, #tpu.memory_space<vmem>>, vector<1x128xf32>
    %2 = vector.broadcast %1 : vector<1x128xf32> to vector<8x128xf32>
    %3 = arith.mulf %0, %2 : vector<8x128xf32>
    %c0_3 = arith.constant 0 : index
    %c0_4 = arith.constant 0 : index
    %4 = vector.load %arg3[%c0_3, %c0_4] : memref<1x128xf32, #tpu.memory_space<vmem>>, vector<1x128xf32>
    %5 = vector.broadcast %4 : vector<1x128xf32> to vector<8x128xf32>
    %6 = arith.addf %3, %5 : vector<8x128xf32>
    %c0_5 = arith.constant 0 : index
    %c0_6 = arith.constant 0 : index
    %7 = vector.load %arg4[%c0_5, %c0_6] : memref<8x128xf32, #tpu.memory_space<vmem>>, vector<8x128xf32>
    tpu.vector_store %arg4[%c0_5, %c0_6], %6 {strides = array<i32>} : memref<8x128xf32, #tpu.memory_space<vmem>>, vector<8x128xf32>,
    return
  }
  func.func @transform_0(%arg0: i32) -> (i32, i32) {
    %c0_i32 = arith.constant 0 : i32
    %c0_i32_0 = arith.constant 0 : i32
    return %arg0, %c0_i32 : i32, i32
  }
  func.func @transform_1(%arg0: i32) -> (i32, i32) {
    %c0_i32 = arith.constant 0 : i32
    %c0_i32_0 = arith.constant 0 : i32
    %c0_i32_1 = arith.constant 0 : i32
    return %c0_i32, %c0_i32_0 : i32, i32
  }
  func.func @transform_2(%arg0: i32) -> (i32, i32) {
    %c0_i32 = arith.constant 0 : i32
    %c0_i32_0 = arith.constant 0 : i32
    %c0_i32_1 = arith.constant 0 : i32
    return %c0_i32, %c0_i32_0 : i32, i32
  }
  func.func @transform_3(%arg0: i32) -> (i32, i32) {
    %c0_i32 = arith.constant 0 : i32
    %c0_i32_0 = arith.constant 0 : i32
    return %arg0, %c0_i32 : i32, i32
  }
}

</mosaic_0001>

<bundles_post_ra>
// kernel: transformer_block.3
= control target key start
LH: loop header
LB: loop body
LE: loop exit
PB: predicated region body
PF: predicated region fallthrough
CT: control target
= control target key end

     0   :  { %s566_s12 = smov 0   ;;  %s568_s13 = smov 0   ;;  %s608_s0 = inlined_call_operand.vmem [shape: f32[2,16,32], index: 0, kind: input, shape index: {}]   ;;  %s609_s1 = inlined_call_operand.vmem [shape: bf16[32,96], index: 1, kind: input, shape index: {}]   ;;  %s610_s2 = inlined_call_operand.vmem [shape: bf16[2,16,32], index: 2, kind: output, shape index: {0}]   ;;  %s611_s3 = inlined_call_operand.vmem [shape: bf16[2,16,64], index: 3, kind: output, shape index: {1}]  }
   0x1   :  { %s570_s14 = smov 0  }
   0x2 LB: > { %s26_s15 = sadd.s32 1, %s537_s13  ;;  %p460_p0 = scmp.ge.s32.totalorder %s541_s14, 1  ;;  %s541_s14 = sphi %s570_s14, %s14_s14   ;;  %s537_s13 = sphi %s568_s13, %s613_s13   ;;  %s533_s12 = sphi %s566_s12, %s612_s12  }
   0x3   : > { %p28_p1 = scmp.ge.s32.totalorder %s26_s15, 2  ;;  %p163_p2 = scmp.lt.s32.totalorder %s541_s14, 3 }
   0x5   : > { %s615_s15 = smov (%p28_p1, %s26_s15), 0  ;;  %p164_p3 = pnand %p460_p0, %p163_p2 }
   0x6   : > { %v517_v0 = vld [vmem:[%s609_s1] sm:$0xff] (!%p164_p3)   ;;  %v543_v1 = vmov (!%p164_p3), 0.0   ;;  %v518_v2 = vld [vmem:[%s609_s1 + $0x8] sm:$0xff] (!%p164_p3)   ;;  %vm544_vm0 = vmmov (!%p164_p3), 0   ;;  %p205_p4 = scmp.lt.s32.totalorder (!%p164_p3), %s533_s12, 1  ;;  %vm254_vm1 = vcmask (!%p164_p3), 261120  }
   0x7   : > { %167 = sbr.rel (%p164_p3) target bundleno = 354 (0x162), region = 28  ;;  %482 = vmatprep.subr.bf16.mxu0 (!%p164_p3), %v543_v1  ;;  %486 = vmatprep.mubr.msk.bf16.mxu0 (!%p164_p3), %vm544_vm0, %v543_v1  ;;  %vm307_vm2 = vcmask (!%p164_p3), 257024   ;;  %s545_s28 = smov (!%p164_p3), 96   ;;  %vm316_vm3 = vcmask (!%p164_p3), 519168  }
   0x8   : > { %483 = vmatpush3.bf16.msra.mxu0 (!%p164_p3), %v517_v0 }
   0x9   : > { %484 = vmatprep.subr.bf16.mxu0 (!%p164_p3), %v543_v1 }
   0xc   : > { %485 = vmatpush3.bf16.msra.mxu0 (!%p164_p3), %v518_v2 }
   0xe   : > { %s617_s12 = smov (!%p205_p4, %s533_s12), 1 }
   0xf   : > { %s474_s20 = sshll.u32 %s617_s12, 4  ;;  %s475_s24 = sshll.u32 %s617_s12, 3 }
  0x10   : > { %s212_s23 = scalar_lea.vmem %s608_s0, %s474_s20  ;;  %s222_s27 = scalar_lea.vmem %s610_s2, %s475_s24 }
  0x11   : > { %v235_v3 = vld [vmem:[%s212_s23] sm:$0xff]  ;;  %v236_v4 = vld [vmem:[%s212_s23 + $0x8] sm:$0xff]  ;;  %s232_s4 = scalar_lea.vmem %s611_s3, %s475_s24 }
  0x12   : > { %v237_v5 = vpack.c.bf16 %v236_v4, %v235_v3 }
  0x14   : > { %487 = vmatmul.mubr.msk.bf16.vlgmr.msra.gmra.mrb[0].mxu0 %vm254_vm1, %v237_v5 }
  0xe7   : > { %v292_v6 = vpop.f32.mrb[0].mxu0 }
  0xe8   : > { %v477_v7 = vpack.c.bf16 %v292_v6, %v292_v6  ;;  %v488_v8 = vpop.f32.mrb[1].mxu0 }
  0xe9   : > { %v295_v9 = vpop.f32.mrb[2].mxu0 }
  0xea   : > { %308 = vst.msk [vmem:[%s222_s27] sm:$0xf] %vm307_vm2, %v477_v7  ;;  %v478_v10 = vpack.c.bf16 %v295_v9, %v295_v9  ;;  %310 = vrot.lane.b32.xlu0 %v477_v7, %s545_s28  ;;  %v489_v11 = vpop.f32.mrb[3].mxu0 }
  0xec   : > { %309 = vst.msk [vmem:[%s222_s27 + $0x4] sm:$0xf] %vm307_vm2, %v478_v10 }
  0xee   : > { %312 = vrot.lane.b32.xlu0 %v478_v10, %s545_s28 }
 0x15c   : > { %v311_v12 = vpop.permute.xlu0 %310 }
 0x15d   : > { %317 = vst.msk [vmem:[%s232_s4] sm:$0xf] %vm316_vm3, %v311_v12 }
 0x160   : > { %v313_v13 = vpop.permute.xlu0 %312 }
 0x161   : > { %318 = vst.msk [vmem:[%s232_s4 + $0x4] sm:$0xf] %vm316_vm3, %v313_v13 }
 0x162 PF: > { %s14_s14 = sadd.s32 1, %s541_s14   ;;  %s612_s12 = smov %s537_s13 }
 0x163   : > { %p11_p5 = scmp.ge.s32.totalorder %s14_s14, 4   ;;  %s613_s13 = smov %s615_s15 }
 0x165   :  { %13 = sbr.rel (!%p11_p5) target bundleno = 2 (0x2), region = 70 }

// kernel: tile.13
= control target key start
LH: loop header
LB: loop body
LE: loop exit
PB: predicated region body
PF: predicated region fallthrough
CT: control target
= control target key end

     0   :  { %s22_s0 = inlined_call_operand.vmem [shape: f32[32], index: 0, kind: input, shape index: {}]   ;;  %s23_s1 = inlined_call_operand.vmem [shape: f32[4,32], index: 1, kind: output, shape index: {}]  }
   0x1   :  { %v4_v0 = vld [vmem:[%s22_s0] ss:$0 sm:$0xff] }
   0x2   :  { %5 = vst [vmem:[%s23_s1] sm:$0xf] %v4_v0 }

// kernel: tile.14
= control target key start
LH: loop header
LB: loop body
LE: loop exit
PB: predicated region body
PF: predicated region fallthrough
CT: control target
= control target key end

     0   :  { %vm7_vm0 = vcmask 261120   ;;  %s37_s8 = smov 32   ;;  %s38_s9 = smov 64   ;;  %vm13_vm1 = vcmask 1048320   ;;  %vm19_vm2 = vcmask 785920   ;;  %vm25_vm3 = vcmask 523520   ;;  %s55_s0 = inlined_call_operand.vmem [shape: f32[4,32], index: 0, kind: input, shape index: {}]   ;;  %s56_s1 = inlined_call_operand.vmem [shape: f32[1,128], index: 1, kind: output, shape index: {}]  }
   0x1   :  { %v4_v0 = vld [vmem:[%s55_s0] sm:$0xf]  ;;  %s36_s0 = smov 96  }
   0x2   :  { %5 = vst [vmem:[#allocation1] sm:$0xf] %v4_v0 }
   0x9   :  { %v10_v1 = vld [vmem:[#allocation1 + $0x3] sm:$0x1]   ;;  %v22_v2 = vld [vmem:[#allocation1 + $0x1] sm:$0x1]   ;;  %v6_v3 = vld [vmem:[#allocation1] sm:$0x1]  }
   0xa   :  { %11 = vrot.lane.b32.xlu0 %v10_v1, %s36_s0  ;;  %23 = vrot.lane.b32.xlu1 %v22_v2, %s37_s8  ;;  %v16_v4 = vld [vmem:[#allocation1 + $0x2] sm:$0x1]   ;;  %8 = vst.msk [vmem:[#allocation0] sm:$0x1] %vm7_vm0, %v6_v3  }
   0xe   :  { %17 = vrot.lane.b32.xlu0 %v16_v4, %s38_s9 }
  0x7c   :  { %v12_v5 = vpop.permute.xlu0 %11   ;;  %v24_v6 = vpop.permute.xlu1 %23  }
  0x7d   :  { %14 = vst.msk [vmem:[#allocation0] sm:$0x1] %vm13_vm1, %v12_v5  }
  0x80   :  { %v18_v7 = vpop.permute.xlu0 %17  }
  0x81   :  { %20 = vst.msk [vmem:[#allocation0] sm:$0x1] %vm19_vm2, %v18_v7  }
  0x82   :  { %26 = vst.msk [vmem:[#allocation0] sm:$0x1] %vm25_vm3, %v24_v6  }
  0x89   :  { %v30_v8 = vld [vmem:[#allocation0] sm:$0x1] }
  0x8a   :  { %32 = vst [vmem:[%s56_s1] sm:$0x1] %v30_v8 }

// kernel: transformer_block.4
= control target key start
LH: loop header
LB: loop body
LE: loop exit
PB: predicated region body
PF: predicated region fallthrough
CT: control target
= control target key end

     0   :  { %s2766_s27 = smov 0   ;;  %s2768_s28 = smov 0   ;;  %s3421_s0 = inlined_call_operand.vmem [shape: f32[2,16,32], index: 0, kind: input, shape index: {}]   ;;  %s3422_s1 = inlined_call_operand.vmem [shape: bf16[2,16,32], index: 1, kind: input, shape index: {}]   ;;  %s3423_s2 = inlined_call_operand.vmem [shape: bf16[2,16,8,64], index: 2, kind: input, shape index: {}]   ;;  %s3424_s3 = inlined_call_operand.vmem [shape: bf16[2,128,3], index: 3, kind: input, shape index: {}]   ;;  %s3425_s4 = inlined_call_operand.vmem [shape: bf16[3,32], index: 4, kind: input, shape index: {}]   ;;  %s3426_s5 = inlined_call_operand.vmem [shape: bf16[3,32,32], index: 5, kind: input, shape index: {}]   ;;  %s3427_s6 = inlined_call_operand.vmem [shape: f32[4,32], index: 6, kind: input, shape index: {}]   ;;  %s3428_s7 = inlined_call_operand.vmem [shape: f32[2,16,32], index: 7, kind: output, shape index: {0}]   ;;  %s3429_s8 = inlined_call_operand.vmem [shape: f32[2,1,2,32], index: 8, kind: output, shape index: {1}]  }
   0x1   :  { %s2770_s29 = smov 0  }
   0x2 LB: > { %s31_s30 = sadd.s32 1, %s2711_s28  ;;  %p2350_p0 = scmp.ge.s32.totalorder %s2715_s29, 1  ;;  %s2715_s29 = sphi %s2770_s29, %s19_s29   ;;  %s2711_s28 = sphi %s2768_s28, %s3431_s28   ;;  %s2707_s27 = sphi %s2766_s27, %s3430_s27  }
   0x3   : > { %p33_p1 = scmp.ge.s32.totalorder %s31_s30, 2  ;;  %p339_p2 = scmp.lt.s32.totalorder %s2715_s29, 3 }
   0x5   : > { %s3433_s30 = smov (%p33_p1, %s31_s30), 0  ;;  %p340_p3 = pnand %p2350_p0, %p339_p2 }
   0x6   : > { %v527_v0 = vld [vmem:[%s3425_s4] sm:$0x3] (!%p340_p3)  ;;  %vm598_vm0 = vcmask (!%p340_p3), 1040384   ;;  %vm599_vm1 = vcmask (!%p340_p3), 1041408   ;;  %p416_p4 = scmp.lt.s32.totalorder (!%p340_p3), %s2707_s27, 1  ;;  %v2717_v1 = vmov (!%p340_p3), 65535  }
   0x7   : > { %343 = sbr.rel (%p340_p3) target bundleno = 1093 (0x445), region = 48  ;;  %v600_v2 = vsel (!%p340_p3), %vm598_vm0, 4294967295, %v2717_v1  ;;  %vm573_vm2 = vcmask (!%p340_p3), 23552   ;;  %v2623_v13 = vld [vmem:[%s3426_s5] sm:$0xff] (!%p340_p3)   ;;  %v2624_v14 = vld [vmem:[%s3426_s5 + $0x8] sm:$0xff] (!%p340_p3)   ;;  %v2625_v15 = vld [vmem:[%s3426_s5 + $0x10] sm:$0xff] (!%p340_p3)  }
   0x8   : > { %v601_v3 = vsel (!%p340_p3), %vm599_vm1, %v600_v2, 0  ;;  %2527 = vmatprep.subr.bf16.mxu1 (!%p340_p3), %v2623_v13  ;;  %v2626_v16 = vld [vmem:[%s3426_s5 + $0x18] sm:$0xff] (!%p340_p3)   ;;  %v2362_v17 = vld [vmem:[%s3427_s6] ss:$0 sm:$0xff] (!%p340_p3)  ;;  %vm747_vm3 = vcmask (!%p340_p3), 261120   ;;  %s2719_s16 = smov (!%p340_p3), 32  }
   0x9   : > { %v603_v4 = vand.u32 (!%p340_p3), %v601_v3, %v527_v0  ;;  %2528 = vmatpush3.bf16.msra.mxu1 (!%p340_p3), %v2623_v13  ;;  %s2720_s21 = smov (!%p340_p3), 96   ;;  %vm2040_vm4 = vcmask (!%p340_p3), 1041409   ;;  %vm2043_vm5 = vcmask (!%p340_p3), 1042434   ;;  %vm2046_vm6 = vcmask (!%p340_p3), 1043459  }
   0xa   : > { %2529 = vmatprep.subr.bf16.mxu1 (!%p340_p3), %v2624_v14  ;;  %vm2049_vm7 = vcmask (!%p340_p3), 1044484   ;;  %vm2052_vm8 = vcmask (!%p340_p3), 1045509   ;;  %vm2055_vm9 = vcmask (!%p340_p3), 1046534   ;;  %vm2058_vm10 = vcmask (!%p340_p3), 1047559  }
   0xb   : > { %2509 = vmatprep.subr.bf16.mxu0 (!%p340_p3), %v603_v4  ;;  %vm2162_vm11 = vcmask (!%p340_p3), 254976  }
   0xc   : > { %2510 = vmatpush3.bf16.msra.mxu0 (!%p340_p3), %v603_v4 }
   0xd   : > { %2530 = vmatpush3.bf16.msra.mxu1 (!%p340_p3), %v2624_v14  ;;  %2547 = vmatprep.subr.bf16.mxu0 (!%p340_p3), %v2625_v15 }
   0xe   : > { %s3435_s27 = smov (!%p416_p4, %s2707_s27), 1 }
   0xf   : > { %s2424_s11 = sshll.u32 %s3435_s27, 6  ;;  %s2423_s25 = sshll.u32 %s3435_s27, 3 }
  0x10   : > { %s453_s14 = scalar_lea.vmem %s3424_s3, %s2424_s11  ;;  %s433_s10 = scalar_lea.vmem %s3422_s1, %s2423_s25 }
  0x11   : > { %v2615_v5 = vld [vmem:[%s453_s14] sm:$0xff]   ;;  %v2616_v6 = vld [vmem:[%s453_s14 + $0x8] sm:$0xff]   ;;  %v2617_v7 = vld [vmem:[%s453_s14 + $0x10] sm:$0xff]   ;;  %s2422_s26 = sshll.u32 %s3435_s27, 4  ;;  %s2361_s15 = sshll.u32 %s3435_s27, 1 }
  0x12   : > { %2511 = vmatprep.mubr.msk.bf16.mxu0 %vm573_vm2, %v2615_v5  ;;  %v2618_v8 = vld [vmem:[%s453_s14 + $0x18] sm:$0xff]   ;;  %v2619_v9 = vld [vmem:[%s453_s14 + $0x20] sm:$0xff]   ;;  %v2620_v10 = vld [vmem:[%s453_s14 + $0x28] sm:$0xff]   ;;  %s3090_s12 = scalar_lea.vmem %s3421_s0, %s2422_s26  ;;  %s471_s18 = scalar_lea.vmem %s3429_s8, %s2361_s15 }
  0x13   : > { %2512 = vmatmul.mubr.msk.bf16.vlgmr.msra.gmra.mrb[0].mxu0 %vm573_vm2, %v2616_v6  ;;  %v2621_v11 = vld [vmem:[%s453_s14 + $0x30] sm:$0xff]   ;;  %v2622_v12 = vld [vmem:[%s453_s14 + $0x38] sm:$0xff]   ;;  %s2842_s14 = scalar_lea.vmem %s3423_s2, %s2424_s11  ;;  %s3323_s11 = scalar_lea.vmem %s3428_s7, %s2422_s26 }
  0x14   : > { %2515 = vmatprep.mubr.msk.bf16.mxu0 %vm573_vm2, %v2617_v7  ;;  %2548 = vmatpush3.bf16.msra.mxu0 %v2625_v15  ;;  %v2428_v15 = vld [vmem:[%s433_s10] sm:$0xff]  }
  0x15   : > { %2549 = vmatprep.subr.bf16.mxu0 %v2626_v16 }
  0x18   : > { %2550 = vmatpush3.bf16.msra.mxu0 %v2626_v16  ;;  %v2429_v16 = vunpack.c.l.bf16 %v2428_v15 }
  0x1b   : > { %2516 = vmatmul.mubr.msk.bf16.gmra.mrb[4].mxu0 %vm573_vm2, %v2618_v8 }
  0x1c   : > { %2519 = vmatprep.mubr.msk.bf16.mxu0 %vm573_vm2, %v2619_v9 }
  0x23   : > { %2520 = vmatmul.mubr.msk.bf16.gmra.mrb[8].mxu0 %vm573_vm2, %v2620_v10  ;;  %v2718_v10 = vmov 1966171168  }
  0x24   : > { %2523 = vmatprep.mubr.msk.bf16.mxu0 %vm573_vm2, %v2621_v11  ;;  %v953_v11 = vunpack.c.l.s4 %v2718_v10 }
  0x26   : > { %v954_v13 = vunpack.c.0.s8 %v953_v11 }
  0x2b   : > { %2524 = vmatmul.mubr.msk.bf16.gmra.mrb[12].mxu0 %vm573_vm2, %v2622_v12  ;;  %v955_v12 = vlaneseq }
  0x2d   : > { %v956_v14 = vshrl.u32 %v955_v12, 7 }
  0xe6   : > { %v2513_v18 = vpop.f32.mrb[0].mxu0 }
  0xe7   : > { %v648_v19 = vadd.f32 %v2513_v18, %v2362_v17  ;;  %v639_v20 = vpop.f32.mrb[1].mxu0 }
  0xe8   : > { %v640_v21 = vadd.f32 %v2362_v17, %v639_v20  ;;  %v2514_v22 = vpop.f32.mrb[2].mxu0 }
  0xe9   : > { %v651_v23 = vadd.f32 %v2514_v22, %v2362_v17  ;;  %v642_v24 = vpop.f32.mrb[3].mxu0  ;;  %v704_v26 = vmax.f32 %v648_v19, 0.0  ;;  %v951_v19 = vcombine.high %v2429_v16, %v2429_v16 }
  0xea   : > { %v643_v25 = vadd.f32 %v2362_v17, %v642_v24  ;;  %v702_v28 = vmax.f32 %v640_v21, 0.0 }
  0xeb   : > { %v705_v27 = vmax.f32 %v651_v23, 0.0 }
  0xec   : > { %v703_v29 = vmax.f32 %v643_v25, 0.0  ;;  %v2844_v25 = vsub.s32 0, %v956_v14 }
  0xed   : > { %v719_v30 = vpack.c.bf16 %v705_v27, %v704_v26  ;;  %v2847_v27 = vld [vmem:[%s2842_s14 + $0x8] sm:$0xff]  }
  0xee   : > { %v2517_v31 = vpop.f32.mrb[4].mxu0  ;;  %v718_v32 = vpack.c.bf16 %v703_v29, %v702_v28  ;;  %v2430_v29 = vunpack.c.h.bf16 %v2428_v15 }
  0xef   : > { %v664_v33 = vadd.f32 %v2517_v31, %v2362_v17  ;;  %v655_v34 = vpop.f32.mrb[5].mxu0 }
  0xf0   : > { %v656_v35 = vadd.f32 %v2362_v17, %v655_v34  ;;  %v2518_v36 = vpop.f32.mrb[6].mxu0  ;;  %2531 = vmatprep.mubr.msk.bf16.mxu1 %vm747_vm3, %v718_v32  ;;  %v2437_v32 = vunpack.c.l.bf16 %v2847_v27 }
  0xf1   : > { %v667_v37 = vadd.f32 %v2518_v36, %v2362_v17  ;;  %v658_v38 = vpop.f32.mrb[7].mxu0  ;;  %2532 = vmatmul.mubr.msk.bf16.vlgmr.msra.gmra.mrb[0].mxu1 %vm747_vm3, %v719_v30  ;;  %v708_v40 = vmax.f32 %v664_v33, 0.0  ;;  %v2850_v30 = vld [vmem:[%s2842_s14] sm:$0xff]  }
  0xf2   : > { %v659_v39 = vadd.f32 %v2362_v17, %v658_v38  ;;  %v706_v42 = vmax.f32 %v656_v35, 0.0  ;;  %v2438_v35 = vunpack.c.h.bf16 %v2847_v27  ;;  %v2866_v38 = vld [vmem:[%s3427_s6 + $0x1] ss:$0 sm:$0xff] }
  0xf3   : > { %v709_v41 = vmax.f32 %v667_v37, 0.0 }
  0xf4   : > { %v707_v43 = vmax.f32 %v659_v39, 0.0  ;;  %v2433_v39 = vunpack.c.l.bf16 %v2850_v30 }
  0xf5   : > { %v721_v44 = vpack.c.bf16 %v709_v41, %v708_v40  ;;  %v2434_v41 = vunpack.c.h.bf16 %v2850_v30 }
  0xf6   : > { %v720_v45 = vpack.c.bf16 %v707_v43, %v706_v42  ;;  %v2521_v46 = vpop.f32.mrb[8].mxu0  ;;  %v2873_v43 = vld [vmem:[%s2842_s14 + $0x18] sm:$0xff]  }
  0xf7   : > { %v680_v47 = vadd.f32 %v2521_v46, %v2362_v17  ;;  %v671_v48 = vpop.f32.mrb[9].mxu0 }
  0xf8   : > { %v672_v49 = vadd.f32 %v2362_v17, %v671_v48  ;;  %v2522_v50 = vpop.f32.mrb[10].mxu0  ;;  %2535 = vmatprep.mubr.msk.bf16.mxu1 %vm747_vm3, %v720_v45 }
  0xf9   : > { %v683_v51 = vadd.f32 %v2522_v50, %v2362_v17  ;;  %v674_v52 = vpop.f32.mrb[11].mxu0  ;;  %2536 = vmatmul.mubr.msk.bf16.gmra.mrb[4].mxu1 %vm747_vm3, %v721_v44  ;;  %v712_v54 = vmax.f32 %v680_v47, 0.0  ;;  %v2880_v47 = vld [vmem:[%s2842_s14 + $0x10] sm:$0xff]  }
  0xfa   : > { %v675_v53 = vadd.f32 %v2362_v17, %v674_v52  ;;  %v710_v56 = vmax.f32 %v672_v49, 0.0  ;;  %v2442_v10 = vunpack.c.h.bf16 %v2880_v47 }
  0xfb   : > { %v713_v55 = vmax.f32 %v683_v51, 0.0 }
  0xfc   : > { %v711_v57 = vmax.f32 %v675_v53, 0.0  ;;  %v1000_v53 = vcombine.high %v2430_v29, %v2430_v29 }
  0xfd   : > { %v723_v58 = vpack.c.bf16 %v713_v55, %v712_v54 }
  0xfe   : > { %v722_v59 = vpack.c.bf16 %v711_v57, %v710_v56  ;;  %v2525_v60 = vpop.f32.mrb[12].mxu0 }
  0xff   : > { %v696_v61 = vadd.f32 %v2525_v60, %v2362_v17  ;;  %v687_v62 = vpop.f32.mrb[13].mxu0 }
 0x100   : > { %v688_v63 = vadd.f32 %v2362_v17, %v687_v62  ;;  %v2526_v0 = vpop.f32.mrb[14].mxu0  ;;  %2539 = vmatprep.mubr.msk.bf16.mxu1 %vm747_vm3, %v722_v59  ;;  %v2441_v62 = vunpack.c.l.bf16 %v2880_v47 }
 0x101   : > { %v699_v1 = vadd.f32 %v2526_v0, %v2362_v17  ;;  %v690_v2 = vpop.f32.mrb[15].mxu0  ;;  %2540 = vmatmul.mubr.msk.bf16.gmra.mrb[8].mxu1 %vm747_vm3, %v723_v58  ;;  %v716_v4 = vmax.f32 %v696_v61, 0.0  ;;  %v2445_v58 = vunpack.c.l.bf16 %v2873_v43 }
 0x102   : > { %v691_v3 = vadd.f32 %v2362_v17, %v690_v2  ;;  %v714_v6 = vmax.f32 %v688_v63, 0.0  ;;  %v2831_v17 = vsub.s32 %v954_v13, %v956_v14  ;;  %v2446_v2 = vunpack.c.h.bf16 %v2873_v43 }
 0x103   : > { %v717_v5 = vmax.f32 %v699_v1, 0.0 }
 0x104   : > { %v715_v7 = vmax.f32 %v691_v3, 0.0  ;;  %v958_v18 = vrot.slane %v2429_v16, %v2831_v17  ;;  %v965_v22 = vrot.slane %v951_v19, %v2831_v17  ;;  %v1007_v37 = vrot.slane %v2430_v29, %v2831_v17  ;;  %v2921_v19 = vld [vmem:[%s2842_s14 + $0x20] sm:$0xff]  }
 0x105   : > { %v725_v8 = vpack.c.bf16 %v717_v5, %v716_v4 }
 0x106   : > { %v724_v9 = vpack.c.bf16 %v715_v7, %v714_v6  ;;  %v966_v20 = vcombine.high %v958_v18, %v958_v18  ;;  %v974_v21 = vrot.slane %v958_v18, %v2831_v17  ;;  %v967_v26 = vcombine.high %v965_v22, %v965_v22  ;;  %v2918_v18 = vld [vmem:[%s2842_s14 + $0x28] sm:$0xff]  }
 0x107   : > { %v2853_v31 = vrot.slane %v965_v22, %v2831_v17  ;;  %v1015_v52 = vcombine.high %v1007_v37, %v1007_v37  ;;  %v2898_v63 = vrot.slane %v1007_v37, %v2831_v17  ;;  %v1014_v7 = vrot.slane %v1000_v53, %v2831_v17 }
 0x108   : > { %2543 = vmatprep.mubr.msk.bf16.mxu1 %vm747_vm3, %v724_v9  ;;  %v988_v23 = vrot.slane %v966_v20, %v2831_v17  ;;  %v996_v24 = vcombine.high %v974_v21, %v974_v21  ;;  %v2858_v34 = vrot.slane %v967_v26, %v2831_v17  ;;  %v1052_v40 = vrot.slane %v974_v21, %v2844_v25 }
 0x109   : > { %2544 = vmatmul.mubr.msk.bf16.gmra.mrb[12].mxu1 %vm747_vm3, %v725_v8  ;;  %v997_v44 = vcombine.high %v2853_v31, %v2853_v31  ;;  %v1068_v1 = vrot.slane %v2853_v31, %v2844_v25  ;;  %v1037_v6 = vrot.slane %v1015_v52, %v2831_v17  ;;  %v1045_v13 = vcombine.high %v2898_v63, %v2898_v63 }
 0x10a   : > { %v998_v28 = vcombine.high %v988_v23, %v988_v23  ;;  %v1060_v33 = vrot.slane %v996_v24, %v2844_v25  ;;  %v1056_v42 = vrot.slane %v988_v23, %v2844_v25  ;;  %v999_v48 = vcombine.high %v2858_v34, %v2858_v34 }
 0x10b   : > { %v1129_v55 = vsub.f32 %v1052_v40, %v2433_v39  ;;  %v1076_v61 = vrot.slane %v997_v44, %v2844_v25  ;;  %v1072_v11 = vrot.slane %v2858_v34, %v2844_v25  ;;  %v1047_v23 = vcombine.high %v1037_v6, %v1037_v6 }
 0x10c   : > { %v1064_v36 = vrot.slane %v998_v28, %v2844_v25  ;;  %v1131_v46 = vsub.f32 %v1060_v33, %v2437_v32  ;;  %v1130_v57 = vsub.f32 %v1056_v42, %v2434_v41  ;;  %v1080_v3 = vrot.slane %v999_v48, %v2844_v25 }
 0x10d   : > { %v1135_v16 = vsub.f32 %v1076_v61, %v2445_v58  ;;  %v1016_v24 = vcombine.high %v1014_v7, %v1014_v7  ;;  %v1133_v28 = vsub.f32 %v1068_v1, %v2441_v62  ;;  %v1134_v31 = vsub.f32 %v1072_v11, %v2442_v10 }
 0x10e   : > { %v1132_v51 = vsub.f32 %v1064_v36, %v2438_v35  ;;  %v1136_v22 = vsub.f32 %v1080_v3, %v2446_v2  ;;  %v2453_v36 = vunpack.c.l.bf16 %v2918_v18  ;;  %v1092_v37 = vrot.slane %v1045_v13, %v2844_v25  ;;  %v2963_v3 = vld [vmem:[%s2842_s14 + $0x30] sm:$0xff]  }
 0x10f   : > { %v2449_v40 = vunpack.c.l.bf16 %v2921_v19  ;;  %v1084_v44 = vrot.slane %v2898_v63, %v2844_v25 }
 0x1c4   : > { %v2533_v45 = vpop.f32.mrb[0].mxu1 }
 0x1c5   : > { %v815_v49 = vadd.f32 %v2533_v45, %v2866_v38  ;;  %v806_v50 = vpop.f32.mrb[1].mxu1  ;;  %v2454_v45 = vunpack.c.h.bf16 %v2918_v18 }
 0x1c6   : > { %v807_v54 = vadd.f32 %v2866_v38, %v806_v50  ;;  %v2534_v56 = vpop.f32.mrb[2].mxu1  ;;  %v1096_v50 = vrot.slane %v1047_v23, %v2844_v25 }
 0x1c7   : > { %v818_v59 = vadd.f32 %v2534_v56, %v2866_v38  ;;  %889 = vrot.lane.b32.xlu1 %v815_v49, %s2719_s16  ;;  %v809_v60 = vpop.f32.mrb[3].mxu1  ;;  %v1147_v4 = vadd.f32 %v1131_v46, %v815_v49  ;;  %v1030_v46 = vrot.slane %v1014_v7, %v2831_v17 }
 0x1c8   : > { %v810_v0 = vadd.f32 %v2866_v38, %v809_v60  ;;  %885 = vrot.lane.b32.xlu0 %v807_v54, %s2719_s16  ;;  %v1145_v8 = vadd.f32 %v1129_v55, %v807_v54  ;;  %v2450_v54 = vunpack.c.h.bf16 %v2921_v19  ;;  %v1088_v55 = vrot.slane %v1037_v6, %v2844_v25  ;;  %v2955_v60 = vld [vmem:[%s2842_s14 + $0x38] sm:$0xff]   ;;  %v2394_v19 = vld [vmem:[%s3427_s6 + $0x2] ss:$0 sm:$0xff] }
 0x1c9   : > { %v1148_v5 = vadd.f32 %v1132_v51, %v818_v59  ;;  %v1044_v51 = vrot.slane %v1016_v24, %v2831_v17  ;;  %v1046_v61 = vcombine.high %v1030_v46, %v1030_v46  ;;  %v1140_v1 = vsub.f32 %v1096_v50, %v2454_v45 }
 0x1ca   : > { %v1146_v9 = vadd.f32 %v1130_v57, %v810_v0  ;;  %v1137_v6 = vsub.f32 %v1084_v44, %v2449_v40  ;;  %v2462_v23 = vunpack.c.h.bf16 %v2955_v60 }
 0x1cb   : > { %v1162_v12 = vpack.c.bf16 %v1148_v5, %v1147_v4  ;;  %891 = vrot.lane.b32.xlu1 %v818_v59, %s2719_s16  ;;  %v1048_v4 = vcombine.high %v1044_v51, %v1044_v51 }
 0x1cc   : > { %v1161_v14 = vpack.c.bf16 %v1146_v9, %v1145_v8  ;;  %v2537_v15 = vpop.f32.mrb[4].mxu1  ;;  %887 = vrot.lane.b32.xlu0 %v810_v0, %s2719_s16  ;;  %v1139_v0 = vsub.f32 %v1092_v37, %v2453_v36  ;;  %v1138_v8 = vsub.f32 %v1088_v55, %v2450_v54 }
 0x1cd   : > { %v2924_v20 = vadd.f32 %v2537_v15, %v2866_v38  ;;  %v822_v21 = vpop.f32.mrb[5].mxu1  ;;  %v2457_v15 = vunpack.c.l.bf16 %v2963_v3  ;;  %v1112_v24 = vrot.slane %v1048_v4, %v2844_v25 }
 0x1ce   : > { %v823_v26 = vadd.f32 %v2866_v38, %v822_v21  ;;  %v2538_v29 = vpop.f32.mrb[6].mxu1  ;;  %2551 = vmatprep.mubr.msk.bf16.mxu0 %vm747_vm3, %v1161_v14  ;;  %v1108_v14 = vrot.slane %v1046_v61, %v2844_v25 }
 0x1cf   : > { %v2935_v33 = vadd.f32 %v2538_v29, %v2866_v38  ;;  %v825_v34 = vpop.f32.mrb[7].mxu1  ;;  %2552 = vmatmul.mubr.msk.bf16.vlgmr.msra.gmra.mrb[16].mxu0 %vm747_vm3, %v1162_v12  ;;  %v1151_v48 = vadd.f32 %v1135_v16, %v2924_v20  ;;  %v2461_v12 = vunpack.c.l.bf16 %v2955_v60  ;;  %v1100_v16 = vrot.slane %v1030_v46, %v2844_v25 }
 0x1d0   : > { %v826_v42 = vadd.f32 %v2866_v38, %v825_v34  ;;  %893 = vrot.lane.b32.xlu0 %v823_v26, %s2719_s16  ;;  %v1149_v52 = vadd.f32 %v1133_v28, %v823_v26  ;;  %v2458_v29 = vunpack.c.h.bf16 %v2963_v3 }
 0x1d1   : > { %v1152_v49 = vadd.f32 %v1136_v22, %v2935_v33  ;;  %v1143_v46 = vsub.f32 %v1108_v14, %v2461_v12 }
 0x1d2   : > { %v1150_v53 = vadd.f32 %v1134_v31, %v826_v42  ;;  %v1104_v31 = vrot.slane %v1044_v51, %v2844_v25  ;;  %v1141_v25 = vsub.f32 %v1100_v16, %v2457_v15 }
 0x1d3   : > { %v1164_v56 = vpack.c.bf16 %v1152_v49, %v1151_v48  ;;  %v1144_v49 = vsub.f32 %v1112_v24, %v2462_v23 }
 0x1d4   : > { %v1163_v57 = vpack.c.bf16 %v1150_v53, %v1149_v52  ;;  %v2541_v59 = vpop.f32.mrb[8].mxu1  ;;  %895 = vrot.lane.b32.xlu0 %v826_v42, %s2719_s16  ;;  %v1142_v52 = vsub.f32 %v1104_v31, %v2458_v29 }
 0x1d5   : > { %v847_v63 = vadd.f32 %v2541_v59, %v2866_v38  ;;  %v838_v17 = vpop.f32.mrb[9].mxu1 }
 0x1d6   : > { %v839_v5 = vadd.f32 %v2866_v38, %v838_v17  ;;  %v2542_v7 = vpop.f32.mrb[10].mxu1  ;;  %2555 = vmatprep.mubr.msk.bf16.mxu0 %vm747_vm3, %v1163_v57 }
 0x1d7   : > { %v850_v9 = vadd.f32 %v2542_v7, %v2866_v38  ;;  %905 = vrot.lane.b32.xlu1 %v847_v63, %s2719_s16  ;;  %v841_v11 = vpop.f32.mrb[11].mxu1  ;;  %2556 = vmatmul.mubr.msk.bf16.gmra.mrb[20].mxu0 %vm747_vm3, %v1164_v56  ;;  %v1155_v21 = vadd.f32 %v1139_v0, %v847_v63 }
 0x1d8   : > { %v842_v13 = vadd.f32 %v2866_v38, %v841_v11  ;;  %901 = vrot.lane.b32.xlu0 %v839_v5, %s2719_s16  ;;  %v1153_v26 = vadd.f32 %v1137_v6, %v839_v5 }
 0x1d9   : > { %v1156_v22 = vadd.f32 %v1140_v1, %v850_v9  ;;  %v2627_v1 = vld [vmem:[%s3426_s5 + $0x20] sm:$0xff]  }
 0x1da   : > { %v1154_v28 = vadd.f32 %v1138_v8, %v842_v13  ;;  %2567 = vmatprep.subr.bf16.mxu1 %v2627_v1 }
 0x1db   : > { %v1166_v34 = vpack.c.bf16 %v1156_v22, %v1155_v21  ;;  %907 = vrot.lane.b32.xlu1 %v850_v9, %s2719_s16  ;;  %2568 = vmatpush3.bf16.msra.mxu1 %v2627_v1 }
 0x1dc   : > { %v1165_v37 = vpack.c.bf16 %v1154_v28, %v1153_v26  ;;  %v2545_v42 = vpop.f32.mrb[12].mxu1  ;;  %903 = vrot.lane.b32.xlu0 %v842_v13, %s2719_s16 }
 0x1dd   : > { %v863_v44 = vadd.f32 %v2545_v42, %v2866_v38  ;;  %v854_v48 = vpop.f32.mrb[13].mxu1 }
 0x1de   : > { %v855_v50 = vadd.f32 %v2866_v38, %v854_v48  ;;  %v2546_v51 = vpop.f32.mrb[14].mxu1  ;;  %2559 = vmatprep.mubr.msk.bf16.mxu0 %vm747_vm3, %v1165_v37 }
 0x1df   : > { %v866_v53 = vadd.f32 %v2546_v51, %v2866_v38  ;;  %913 = vrot.lane.b32.xlu1 %v863_v44, %s2719_s16  ;;  %v857_v55 = vpop.f32.mrb[15].mxu1  ;;  %2560 = vmatmul.mubr.msk.bf16.gmra.mrb[24].mxu0 %vm747_vm3, %v1166_v34  ;;  %v1159_v57 = vadd.f32 %v1143_v46, %v863_v44 }
 0x1e0   : > { %v858_v56 = vadd.f32 %v2866_v38, %v857_v55  ;;  %897 = vrot.lane.b32.xlu0 %v2924_v20, %s2719_s16  ;;  %v1157_v61 = vadd.f32 %v1141_v25, %v855_v50  ;;  %v2628_v38 = vld [vmem:[%s3426_s5 + $0x28] sm:$0xff]  }
 0x1e1   : > { %v1160_v59 = vadd.f32 %v1144_v49, %v866_v53  ;;  %2569 = vmatprep.subr.bf16.mxu1 %v2628_v38 }
 0x1e2   : > { %v1158_v63 = vadd.f32 %v1142_v52, %v858_v56  ;;  %2570 = vmatpush3.bf16.msra.mxu1 %v2628_v38 }
 0x1e3   : > { %v1168_v0 = vpack.c.bf16 %v1160_v59, %v1159_v57  ;;  %909 = vrot.lane.b32.xlu1 %v855_v50, %s2719_s16 }
 0x1e4   : > { %v1167_v17 = vpack.c.bf16 %v1158_v63, %v1157_v61  ;;  %899 = vrot.lane.b32.xlu0 %v2935_v33, %s2719_s16 }
 0x1e6   : > { %2563 = vmatprep.mubr.msk.bf16.mxu0 %vm747_vm3, %v1167_v17 }
 0x1e7   : > { %911 = vrot.lane.b32.xlu1 %v858_v56, %s2719_s16  ;;  %2564 = vmatmul.mubr.msk.bf16.gmra.mrb[28].mxu0 %vm747_vm3, %v1168_v0 }
 0x1eb   : > { %915 = vrot.lane.b32.xlu1 %v866_v53, %s2719_s16 }
 0x239   : > { %v890_v20 = vpop.permute.xlu1 %889 }
 0x23a   : > { %v935_v33 = vadd.f32 %v2437_v32, %v890_v20  ;;  %v886_v4 = vpop.permute.xlu0 %885 }
 0x23b   : > { %v933_v6 = vadd.f32 %v2433_v39, %v886_v4 }
 0x23c   : > { %1803 = vrot.lane.b32.xlu0 %v935_v33, %s2720_s21 }
 0x23d   : > { %v892_v5 = vpop.permute.xlu1 %891 }
 0x23e   : > { %v936_v7 = vadd.f32 %v2438_v35, %v892_v5  ;;  %v888_v8 = vpop.permute.xlu0 %887 }
 0x23f   : > { %v934_v9 = vadd.f32 %v2434_v41, %v888_v8 }
 0x240   : > { %1805 = vrot.lane.b32.xlu1 %v936_v7, %s2720_s21  ;;  %1799 = vrot.lane.b32.xlu0 %v933_v6, %s2720_s21 }
 0x242   : > { %v894_v32 = vpop.permute.xlu0 %893 }
 0x244   : > { %1801 = vrot.lane.b32.xlu0 %v934_v9, %s2720_s21 }
 0x246   : > { %v896_v11 = vpop.permute.xlu0 %895 }
 0x249   : > { %v906_v13 = vpop.permute.xlu1 %905 }
 0x24a   : > { %v943_v14 = vadd.f32 %v2453_v36, %v906_v13  ;;  %v902_v39 = vpop.permute.xlu0 %901 }
 0x24c   : > { %1819 = vrot.lane.b32.xlu1 %v943_v14, %s2720_s21 }
 0x24d   : > { %v908_v27 = vpop.permute.xlu1 %907 }
 0x24e   : > { %v944_v35 = vadd.f32 %v2454_v45, %v908_v27  ;;  %v904_v16 = vpop.permute.xlu0 %903  ;;  %v937_v45 = vadd.f32 %v2441_v62, %v894_v32  ;;  %v941_v62 = vadd.f32 %v2449_v40, %v902_v39 }
 0x24f   : > { %v942_v41 = vadd.f32 %v2450_v54, %v904_v16 }
 0x250   : > { %1821 = vrot.lane.b32.xlu1 %v944_v35, %s2720_s21 }
 0x251   : > { %v914_v30 = vpop.permute.xlu1 %913 }
 0x252   : > { %v898_v21 = vpop.permute.xlu0 %897  ;;  %v947_v18 = vadd.f32 %v2461_v12, %v914_v30 }
 0x253   : > { %v939_v22 = vadd.f32 %v2445_v58, %v898_v21  ;;  %v938_v58 = vadd.f32 %v2442_v10, %v896_v11 }
 0x254   : > { %1817 = vrot.lane.b32.xlu1 %v942_v41, %s2720_s21 }
 0x255   : > { %v910_v36 = vpop.permute.xlu1 %909  ;;  %1811 = vrot.lane.b32.xlu0 %v939_v22, %s2720_s21 }
 0x256   : > { %v945_v54 = vadd.f32 %v2457_v15, %v910_v36  ;;  %v900_v28 = vpop.permute.xlu0 %899 }
 0x257   : > { %v940_v10 = vadd.f32 %v2446_v2, %v900_v28 }
 0x258   : > { %1827 = vrot.lane.b32.xlu1 %v947_v18, %s2720_s21 }
 0x259   : > { %v912_v24 = vpop.permute.xlu1 %911  ;;  %1807 = vrot.lane.b32.xlu0 %v937_v45, %s2720_s21 }
 0x25a   : > { %v946_v12 = vadd.f32 %v2458_v29, %v912_v24 }
 0x25c   : > { %1823 = vrot.lane.b32.xlu1 %v945_v54, %s2720_s21 }
 0x25d   : > { %1809 = vrot.lane.b32.xlu0 %v938_v58, %s2720_s21  ;;  %v916_v26 = vpop.permute.xlu1 %915  ;;  %v3078_v58 = vld [vmem:[%s3427_s6 + $0x3] ss:$0 sm:$0xff] }
 0x25e   : > { %v948_v47 = vadd.f32 %v2462_v23, %v916_v26 }
 0x260   : > { %1825 = vrot.lane.b32.xlu1 %v946_v12, %s2720_s21 }
 0x261   : > { %1815 = vrot.lane.b32.xlu0 %v941_v62, %s2720_s21 }
 0x264   : > { %1829 = vrot.lane.b32.xlu1 %v948_v47, %s2720_s21 }
 0x265   : > { %1813 = vrot.lane.b32.xlu0 %v940_v10, %s2720_s21 }
 0x2a2   : > { %v2553_v40 = vpop.f32.mrb[16].mxu0 }
 0x2a3   : > { %v1258_v3 = vadd.f32 %v2553_v40, %v2394_v19  ;;  %v1249_v15 = vpop.f32.mrb[17].mxu0 }
 0x2a4   : > { %v1250_v29 = vadd.f32 %v2394_v19, %v1249_v15  ;;  %v2554_v31 = vpop.f32.mrb[18].mxu0 }
 0x2a5   : > { %v1261_v34 = vadd.f32 %v2554_v31, %v2394_v19  ;;  %v1252_v37 = vpop.f32.mrb[19].mxu0  ;;  %v1314_v23 = vmax.f32 %v1258_v3, 0.0 }
 0x2a6   : > { %v1253_v60 = vadd.f32 %v2394_v19, %v1252_v37  ;;  %v1312_v43 = vmax.f32 %v1250_v29, 0.0  ;;  %v3104_v37 = vld [vmem:[%s3090_s12] sm:$0xff] }
 0x2a7   : > { %v1315_v42 = vmax.f32 %v1261_v34, 0.0 }
 0x2a8   : > { %v1313_v2 = vmax.f32 %v1253_v60, 0.0 }
 0x2a9   : > { %v1329_v44 = vpack.c.bf16 %v1315_v42, %v1314_v23 }
 0x2aa   : > { %v1328_v46 = vpack.c.bf16 %v1313_v2, %v1312_v43  ;;  %v2557_v48 = vpop.f32.mrb[20].mxu0 }
 0x2ab   : > { %v1274_v49 = vadd.f32 %v2557_v48, %v2394_v19  ;;  %v1265_v50 = vpop.f32.mrb[21].mxu0 }
 0x2ac   : > { %v1266_v25 = vadd.f32 %v2394_v19, %v1265_v50  ;;  %v2558_v51 = vpop.f32.mrb[22].mxu0  ;;  %2571 = vmatprep.mubr.msk.bf16.mxu1 %vm747_vm3, %v1328_v46 }
 0x2ad   : > { %v1277_v52 = vadd.f32 %v2558_v51, %v2394_v19  ;;  %v1268_v53 = vpop.f32.mrb[23].mxu0  ;;  %2572 = vmatmul.mubr.msk.bf16.vlgmr.msra.gmra.mrb[16].mxu1 %vm747_vm3, %v1329_v44  ;;  %v1318_v56 = vmax.f32 %v1274_v49, 0.0  ;;  %v1978_v49 = vrot.slane %v3104_v37, 2 }
 0x2ae   : > { %v1269_v55 = vadd.f32 %v2394_v19, %v1268_v53  ;;  %v1316_v59 = vmax.f32 %v1266_v25, 0.0 }
 0x2af   : > { %v1319_v57 = vmax.f32 %v1277_v52, 0.0 }
 0x2b0   : > { %v1317_v61 = vmax.f32 %v1269_v55, 0.0 }
 0x2b1   : > { %v1331_v63 = vpack.c.bf16 %v1319_v57, %v1318_v56  ;;  %v1979_v56 = vrot.slane %v3104_v37, 3 }
 0x2b2   : > { %v1330_v0 = vpack.c.bf16 %v1317_v61, %v1316_v59  ;;  %v2561_v17 = vpop.f32.mrb[24].mxu0 }
 0x2b3   : > { %v1290_v1 = vadd.f32 %v2561_v17, %v2394_v19  ;;  %v1281_v38 = vpop.f32.mrb[25].mxu0 }
 0x2b4   : > { %2575 = vmatprep.mubr.msk.bf16.mxu1 %vm747_vm3, %v1330_v0  ;;  %v1282_v20 = vadd.f32 %v2394_v19, %v1281_v38  ;;  %v2562_v33 = vpop.f32.mrb[26].mxu0 }
 0x2b5   : > { %2576 = vmatmul.mubr.msk.bf16.gmra.mrb[20].mxu1 %vm747_vm3, %v1331_v63  ;;  %v1293_v4 = vadd.f32 %v2562_v33, %v2394_v19  ;;  %v1284_v5 = vpop.f32.mrb[27].mxu0  ;;  %v1322_v7 = vmax.f32 %v1290_v1, 0.0 }
 0x2b6   : > { %v1285_v6 = vadd.f32 %v2394_v19, %v1284_v5  ;;  %v1320_v9 = vmax.f32 %v1282_v20, 0.0 }
 0x2b7   : > { %v1323_v8 = vmax.f32 %v1293_v4, 0.0 }
 0x2b8   : > { %v1321_v32 = vmax.f32 %v1285_v6, 0.0 }
 0x2b9   : > { %v1333_v11 = vpack.c.bf16 %v1323_v8, %v1322_v7 }
 0x2ba   : > { %v2565_v13 = vpop.f32.mrb[28].mxu0  ;;  %v1332_v14 = vpack.c.bf16 %v1321_v32, %v1320_v9 }
 0x2bb   : > { %v1306_v39 = vadd.f32 %v2565_v13, %v2394_v19  ;;  %v1297_v27 = vpop.f32.mrb[29].mxu0 }
 0x2bc   : > { %v1298_v35 = vadd.f32 %v2394_v19, %v1297_v27  ;;  %v2566_v16 = vpop.f32.mrb[30].mxu0  ;;  %2579 = vmatprep.mubr.msk.bf16.mxu1 %vm747_vm3, %v1332_v14 }
 0x2bd   : > { %v1309_v30 = vadd.f32 %v2566_v16, %v2394_v19  ;;  %v1300_v41 = vpop.f32.mrb[31].mxu0  ;;  %2580 = vmatmul.mubr.msk.bf16.gmra.mrb[24].mxu1 %vm747_vm3, %v1333_v11  ;;  %v1326_v22 = vmax.f32 %v1306_v39, 0.0 }
 0x2be   : > { %v1301_v21 = vadd.f32 %v2394_v19, %v1300_v41  ;;  %v1324_v18 = vmax.f32 %v1298_v35, 0.0 }
 0x2bf   : > { %v1327_v36 = vmax.f32 %v1309_v30, 0.0 }
 0x2c0   : > { %v1325_v45 = vmax.f32 %v1301_v21, 0.0 }
 0x2c1   : > { %v1335_v24 = vpack.c.bf16 %v1327_v36, %v1326_v22 }
 0x2c2   : > { %v1334_v54 = vpack.c.bf16 %v1325_v45, %v1324_v18 }
 0x2c4   : > { %2583 = vmatprep.mubr.msk.bf16.mxu1 %vm747_vm3, %v1334_v54 }
 0x2c5   : > { %2584 = vmatmul.mubr.msk.bf16.gmra.mrb[28].mxu1 %vm747_vm3, %v1335_v24 }
 0x380   : > { %v2573_v12 = vpop.f32.mrb[16].mxu1 }
 0x381   : > { %v1425_v62 = vadd.f32 %v2573_v12, %v3078_v58  ;;  %v1416_v26 = vpop.f32.mrb[17].mxu1 }
 0x382   : > { %v3083_v28 = vadd.f32 %v3078_v58, %v1416_v26  ;;  %v2574_v47 = vpop.f32.mrb[18].mxu1 }
 0x383   : > { %v1493_v10 = vsel %vm747_vm3, %v1425_v62, -inf  ;;  %v3094_v19 = vadd.f32 %v2574_v47, %v3078_v58  ;;  %v1419_v40 = vpop.f32.mrb[19].mxu1 }
 0x384   : > { %v1494_v3 = vrot.slane %v1493_v10, 4  ;;  %v1479_v15 = vsel %vm747_vm3, %v3083_v28, -inf  ;;  %v3099_v29 = vadd.f32 %v3078_v58, %v1419_v40 }
 0x385   : > { %v1480_v31 = vrot.slane %v1479_v15, 4  ;;  %v1500_v34 = vsel %vm747_vm3, %v3094_v19, -inf }
 0x386   : > { %v1495_v60 = vmax.f32 %v1493_v10, %v1494_v3  ;;  %v1501_v23 = vrot.slane %v1500_v34, 4  ;;  %v1486_v42 = vsel %vm747_vm3, %v3099_v29, -inf }
 0x387   : > { %v1481_v43 = vmax.f32 %v1479_v15, %v1480_v31  ;;  %v1487_v2 = vrot.slane %v1486_v42, 4 }
 0x388   : > { %v1496_v44 = vrot.slane %v1495_v60, 2  ;;  %v1502_v46 = vmax.f32 %v1500_v34, %v1501_v23  ;;  %v2577_v48 = vpop.f32.mrb[20].mxu1 }
 0x389   : > { %v1482_v50 = vrot.slane %v1481_v43, 2  ;;  %v1488_v25 = vmax.f32 %v1486_v42, %v1487_v2  ;;  %v3110_v51 = vadd.f32 %v2577_v48, %v3078_v58  ;;  %v1432_v52 = vpop.f32.mrb[21].mxu1 }
 0x38a   : > { %v1497_v53 = vmax.f32 %v1495_v60, %v1496_v44  ;;  %v1503_v55 = vrot.slane %v1502_v46, 2  ;;  %v3114_v57 = vadd.f32 %v3078_v58, %v1432_v52  ;;  %v2578_v59 = vpop.f32.mrb[22].mxu1 }
 0x38b   : > { %v1483_v61 = vmax.f32 %v1481_v43, %v1482_v50  ;;  %v1489_v63 = vrot.slane %v1488_v25, 2  ;;  %v1521_v0 = vsel %vm747_vm3, %v3110_v51, -inf  ;;  %v3119_v17 = vadd.f32 %v2578_v59, %v3078_v58  ;;  %v1435_v1 = vpop.f32.mrb[23].mxu1 }
 0x38c   : > { %v1498_v38 = vrot.slane %v1497_v53, 1  ;;  %v1504_v20 = vmax.f32 %v1502_v46, %v1503_v55  ;;  %v1522_v33 = vrot.slane %v1521_v0, 4  ;;  %v1507_v4 = vsel %vm747_vm3, %v3114_v57, -inf }
 0x38d   : > { %v1484_v5 = vrot.slane %v1483_v61, 1  ;;  %v1490_v6 = vmax.f32 %v1488_v25, %v1489_v63  ;;  %v1508_v7 = vrot.slane %v1507_v4, 4  ;;  %v1528_v8 = vsel %vm747_vm3, %v3119_v17, -inf }
 0x38e   : > { %v1499_v9 = vmax.f32 %v1497_v53, %v1498_v38  ;;  %v1505_v32 = vrot.slane %v1504_v20, 1  ;;  %v1523_v11 = vmax.f32 %v1521_v0, %v1522_v33  ;;  %v1529_v13 = vrot.slane %v1528_v8, 4  ;;  %v3148_v38 = vpop.permute.xlu0 %1803 }
 0x38f   : > { %v1485_v14 = vmax.f32 %v1483_v61, %v1484_v5  ;;  %v1491_v39 = vrot.slane %v1490_v6, 1  ;;  %v1509_v27 = vmax.f32 %v1507_v4, %v1508_v7  ;;  %v3126_v35 = vadd.f32 %v3078_v58, %v1435_v1 }
 0x390   : > { %v1593_v16 = vsub.f32 %v1425_v62, %v1499_v9  ;;  %v1506_v30 = vmax.f32 %v1504_v20, %v1505_v32  ;;  %v1524_v41 = vrot.slane %v1523_v11, 2  ;;  %v1530_v21 = vmax.f32 %v1528_v8, %v1529_v13  ;;  %v2581_v24 = vpop.f32.mrb[24].mxu1 }
 0x391   : > { %v1591_v22 = vsub.f32 %v3083_v28, %v1485_v14  ;;  %v1492_v36 = vmax.f32 %v1490_v6, %v1491_v39  ;;  %v1510_v18 = vrot.slane %v1509_v27, 2  ;;  %v1514_v45 = vsel %vm747_vm3, %v3126_v35, -inf  ;;  %v1448_v10 = vpop.f32.mrb[25].mxu1 }
 0x392   : > { %v1611_v54 = vmul.f32 1.442695, %v1593_v16  ;;  %v1594_v12 = vsub.f32 %v3094_v19, %v1506_v30  ;;  %v1525_v26 = vmax.f32 %v1523_v11, %v1524_v41  ;;  %v1531_v47 = vrot.slane %v1530_v21, 2  ;;  %v2582_v31 = vpop.f32.mrb[26].mxu1 }
 0x393   : > { %v1607_v40 = vmul.f32 1.442695, %v1591_v22  ;;  %v1592_v62 = vsub.f32 %v3099_v29, %v1492_v36  ;;  %v1511_v3 = vmax.f32 %v1509_v27, %v1510_v18  ;;  %v1515_v15 = vrot.slane %v1514_v45, 4  ;;  %v1451_v23 = vpop.f32.mrb[27].mxu1 }
 0x394   : > { %2629 = vpow2.f32 %v1611_v54  ;;  %v1613_v28 = vmul.f32 1.442695, %v1594_v12  ;;  %v1526_v34 = vrot.slane %v1525_v26, 1  ;;  %v1532_v60 = vmax.f32 %v1530_v21, %v1531_v47  ;;  %v3176_v12 = vpop.permute.xlu0 %1799 }
 0x395   : > { %2631 = vpow2.f32 %v1607_v40  ;;  %v1609_v42 = vmul.f32 1.442695, %v1592_v62  ;;  %v1512_v43 = vrot.slane %v1511_v3, 1  ;;  %v1516_v2 = vmax.f32 %v1514_v45, %v1515_v15 }
 0x396   : > { %2633 = vpow2.f32 %v1613_v28  ;;  %v1527_v19 = vmax.f32 %v1525_v26, %v1526_v34  ;;  %v1533_v44 = vrot.slane %v1532_v60, 1  ;;  %v3134_v46 = vadd.f32 %v2581_v24, %v3078_v58 }
 0x397   : > { %2635 = vpow2.f32 %v1609_v42  ;;  %v1513_v29 = vmax.f32 %v1511_v3, %v1512_v43  ;;  %v1517_v48 = vrot.slane %v1516_v2, 2  ;;  %v3137_v50 = vadd.f32 %v3078_v58, %v1448_v10 }
 0x398   : > { %v1597_v25 = vsub.f32 %v3110_v51, %v1527_v19  ;;  %v1534_v52 = vmax.f32 %v1532_v60, %v1533_v44  ;;  %v1549_v53 = vsel %vm747_vm3, %v3134_v46, -inf  ;;  %v3143_v55 = vadd.f32 %v2582_v31, %v3078_v58  ;;  %v2585_v1 = vpop.f32.mrb[28].mxu1 }
 0x399   : > { %v1595_v59 = vsub.f32 %v3114_v57, %v1513_v29  ;;  %v1518_v61 = vmax.f32 %v1516_v2, %v1517_v48  ;;  %v1550_v63 = vrot.slane %v1549_v53, 4  ;;  %v1535_v0 = vsel %vm747_vm3, %v3137_v50, -inf  ;;  %v3153_v5 = vpop.f32.mrb[29].mxu1 }
 0x39a   : > { %v1619_v20 = vmul.f32 1.442695, %v1597_v25  ;;  %v1598_v51 = vsub.f32 %v3119_v17, %v1534_v52  ;;  %v1536_v33 = vrot.slane %v1535_v0, 4  ;;  %v1556_v4 = vsel %vm747_vm3, %v3143_v55, -inf  ;;  %v3155_v9 = vpop.f32.mrb[30].mxu1 }
 0x39b   : > { %v1615_v6 = vmul.f32 1.442695, %v1595_v59  ;;  %v1519_v7 = vrot.slane %v1518_v61, 1  ;;  %v1551_v57 = vmax.f32 %v1549_v53, %v1550_v63  ;;  %v1557_v8 = vrot.slane %v1556_v4, 4  ;;  %v3160_v14 = vpop.f32.mrb[31].mxu1  ;;  %v3189_v63 = vpop.permute.xlu0 %1801 }
 0x39c   : > { %2637 = vpow2.f32 %v1619_v20  ;;  %v1621_v32 = vmul.f32 1.442695, %v1598_v51  ;;  %v1537_v11 = vmax.f32 %v1535_v0, %v1536_v33  ;;  %v3158_v13 = vadd.f32 %v3078_v58, %v1451_v23 }
 0x39d   : > { %2639 = vpow2.f32 %v1615_v6  ;;  %v1520_v17 = vmax.f32 %v1518_v61, %v1519_v7  ;;  %v1552_v39 = vrot.slane %v1551_v57, 2  ;;  %v1558_v27 = vmax.f32 %v1556_v4, %v1557_v8 }
 0x39e   : > { %v3162_v16 = vpop.eup %2629  ;;  %2641 = vpow2.f32 %v1621_v32  ;;  %v1538_v30 = vrot.slane %v1537_v11, 2  ;;  %v1542_v41 = vsel %vm747_vm3, %v3158_v13, -inf  ;;  %v3167_v21 = vadd.f32 %v2585_v1, %v3078_v58 }
 0x39f   : > { %v3169_v22 = vpop.eup %2631  ;;  %v1653_v36 = vsel %vm747_vm3, %v3162_v16, 0.0  ;;  %v1596_v18 = vsub.f32 %v3126_v35, %v1520_v17  ;;  %v1553_v45 = vmax.f32 %v1551_v57, %v1552_v39  ;;  %v1559_v24 = vrot.slane %v1558_v27, 2 }
 0x3a0   : > { %v3174_v54 = vpop.eup %2633  ;;  %v1654_v26 = vrot.slane %v1653_v36, 4  ;;  %v1639_v47 = vsel %vm747_vm3, %v3169_v22, 0.0  ;;  %v1539_v10 = vmax.f32 %v1537_v11, %v1538_v30  ;;  %v1543_v40 = vrot.slane %v1542_v41, 4 }
 0x3a1   : > { %v3180_v62 = vpop.eup %2635  ;;  %v1640_v3 = vrot.slane %v1639_v47, 4  ;;  %v1660_v15 = vsel %vm747_vm3, %v3174_v54, 0.0  ;;  %v1617_v31 = vmul.f32 1.442695, %v1596_v18  ;;  %v1554_v35 = vrot.slane %v1553_v45, 1 }
 0x3a2   : > { %v1655_v28 = vadd.f32 %v1654_v26, %v1653_v36  ;;  %v1661_v34 = vrot.slane %v1660_v15, 4  ;;  %v1646_v60 = vsel %vm747_vm3, %v3180_v62, 0.0  ;;  %v1540_v23 = vrot.slane %v1539_v10, 1 }
 0x3a3   : > { %v1641_v42 = vadd.f32 %v1640_v3, %v1639_v47  ;;  %v1647_v43 = vrot.slane %v1646_v60, 4  ;;  %2643 = vpow2.f32 %v1617_v31  ;;  %v1555_v2 = vmax.f32 %v1553_v45, %v1554_v35 }
 0x3a4   : > { %v1656_v19 = vrot.slane %v1655_v28, 2  ;;  %v1662_v44 = vadd.f32 %v1661_v34, %v1660_v15  ;;  %v1541_v29 = vmax.f32 %v1539_v10, %v1540_v23  ;;  %v1560_v48 = vmax.f32 %v1558_v27, %v1559_v24 }
 0x3a5   : > { %v1642_v25 = vrot.slane %v1641_v42, 2  ;;  %v1648_v52 = vadd.f32 %v1647_v43, %v1646_v60  ;;  %v1601_v53 = vsub.f32 %v3134_v46, %v1555_v2  ;;  %v1544_v59 = vmax.f32 %v1542_v41, %v1543_v40  ;;  %v3202_v41 = vpop.permute.xlu0 %1811 }
 0x3a6   : > { %v3187_v61 = vpop.eup %2637  ;;  %v1657_v0 = vadd.f32 %v1656_v19, %v1655_v28  ;;  %v1663_v1 = vrot.slane %v1662_v44, 2  ;;  %v1599_v20 = vsub.f32 %v3137_v50, %v1541_v29  ;;  %v1561_v51 = vrot.slane %v1560_v48, 1 }
 0x3a7   : > { %v3192_v33 = vpop.eup %2639  ;;  %v1643_v4 = vadd.f32 %v1642_v25, %v1641_v42  ;;  %v1649_v6 = vrot.slane %v1648_v52, 2  ;;  %v1681_v7 = vsel %vm747_vm3, %v3187_v61, 0.0  ;;  %v1627_v57 = vmul.f32 1.442695, %v1601_v53 }
 0x3a8   : > { %v3196_v8 = vpop.eup %2641  ;;  %v1658_v46 = vrot.slane %v1657_v0, 1  ;;  %v1664_v32 = vadd.f32 %v1663_v1, %v1662_v44  ;;  %v1682_v11 = vrot.slane %v1681_v7, 4  ;;  %v1667_v17 = vsel %vm747_vm3, %v3192_v33, 0.0 }
 0x3a9   : > { %v1644_v39 = vrot.slane %v1643_v4, 1  ;;  %v1650_v27 = vadd.f32 %v1649_v6, %v1648_v52  ;;  %v1668_v50 = vrot.slane %v1667_v17, 4  ;;  %v1688_v30 = vsel %vm747_vm3, %v3196_v8, 0.0  ;;  %v3208_v44 = vpop.permute.xlu0 %1807 }
 0x3aa   : > { %v1659_v36 = vadd.f32 %v1658_v46, %v1657_v0  ;;  %v1665_v18 = vrot.slane %v1664_v32, 1  ;;  %v1683_v45 = vadd.f32 %v1682_v11, %v1681_v7  ;;  %v1689_v24 = vrot.slane %v1688_v30, 4 }
 0x3ab   : > { %v1645_v26 = vadd.f32 %v1644_v39, %v1643_v4  ;;  %v1651_v47 = vrot.slane %v1650_v27, 1  ;;  %v1669_v10 = vadd.f32 %v1668_v50, %v1667_v17  ;;  %2645 = vpow2.f32 %v1627_v57 }
 0x3ac   : > { %2647 = vrcp.f32 %v1659_v36  ;;  %v1666_v40 = vadd.f32 %v1665_v18, %v1664_v32  ;;  %v1684_v3 = vrot.slane %v1683_v45, 2  ;;  %v1690_v15 = vadd.f32 %v1689_v24, %v1688_v30 }
 0x3ad   : > { %v3204_v31 = vpop.eup %2643  ;;  %2649 = vrcp.f32 %v1645_v26  ;;  %v1652_v35 = vadd.f32 %v1651_v47, %v1650_v27  ;;  %v1670_v28 = vrot.slane %v1669_v10, 2  ;;  %v1623_v34 = vmul.f32 1.442695, %v1599_v20 }
 0x3ae   : > { %2651 = vrcp.f32 %v1666_v40  ;;  %v1685_v60 = vadd.f32 %v1684_v3, %v1683_v45  ;;  %v1691_v23 = vrot.slane %v1690_v15, 2  ;;  %v1674_v42 = vsel %vm747_vm3, %v3204_v31, 0.0 }
 0x3af   : > { %2653 = vrcp.f32 %v1652_v35  ;;  %v1671_v43 = vadd.f32 %v1670_v28, %v1669_v10  ;;  %v1675_v2 = vrot.slane %v1674_v42, 4  ;;  %v1562_v19 = vmax.f32 %v1560_v48, %v1561_v51 }
 0x3b0   : > { %v1686_v29 = vrot.slane %v1685_v60, 1  ;;  %v1692_v25 = vadd.f32 %v1691_v23, %v1690_v15  ;;  %2655 = vpow2.f32 %v1623_v34  ;;  %v1545_v52 = vrot.slane %v1544_v59, 2 }
 0x3b1   : > { %v1672_v53 = vrot.slane %v1671_v43, 1  ;;  %v1676_v0 = vadd.f32 %v1675_v2, %v1674_v42  ;;  %v1602_v1 = vsub.f32 %v3143_v55, %v1562_v19  ;;  %v1577_v20 = vsel %vm747_vm3, %v3167_v21, -inf  ;;  %v1806_v19 = vpop.permute.xlu1 %1805 }
 0x3b2   : > { %v1687_v4 = vadd.f32 %v1686_v29, %v1685_v60  ;;  %v1693_v6 = vrot.slane %v1692_v25, 1  ;;  %v1546_v7 = vmax.f32 %v1544_v59, %v1545_v52  ;;  %v1578_v57 = vrot.slane %v1577_v20, 4  ;;  %v3218_v59 = vpop.permute.xlu0 %1809 }
 0x3b3   : > { %v1977_v46 = vrot.slane %v3104_v37, 1  ;;  %v1673_v48 = vadd.f32 %v1672_v53, %v1671_v43  ;;  %v1677_v51 = vrot.slane %v1676_v0, 2  ;;  %v1629_v32 = vmul.f32 1.442695, %v1602_v1 }
 0x3b4   : > { %2657 = vrcp.f32 %v1687_v4  ;;  %v1694_v11 = vadd.f32 %v1693_v6, %v1692_v25  ;;  %v1547_v17 = vrot.slane %v1546_v7, 1  ;;  %v1579_v39 = vmax.f32 %v1577_v20, %v1578_v57 }
 0x3b5   : > { %v3214_v27 = vpop.eup %2645  ;;  %v1982_v55 = vrot.slane %v3104_v37, 6  ;;  %2659 = vrcp.f32 %v1673_v48  ;;  %v1980_v50 = vrot.slane %v3104_v37, 4  ;;  %v1678_v30 = vadd.f32 %v1677_v51, %v1676_v0 }
 0x3b6   : > { %v2648_v36 = vpop.eup %2647  ;;  %2661 = vrcp.f32 %v1694_v11  ;;  %v1709_v18 = vsel %vm747_vm3, %v3214_v27, 0.0  ;;  %v1548_v45 = vmax.f32 %v1546_v7, %v1547_v17  ;;  %v1580_v24 = vrot.slane %v1579_v39, 2 }
 0x3b7   : > { %v2650_v26 = vpop.eup %2649  ;;  %v1769_v47 = vmul.f32 %v2648_v36, %v3162_v16  ;;  %v1983_v10 = vrot.slane %v3104_v37, 7  ;;  %v1679_v40 = vrot.slane %v1678_v30, 1  ;;  %v1710_v3 = vrot.slane %v1709_v18, 4 }
 0x3b8   : > { %v2652_v15 = vpop.eup %2651  ;;  %v1767_v35 = vmul.f32 %v2650_v26, %v3169_v22  ;;  %2663 = vpow2.f32 %v1629_v32  ;;  %v1600_v28 = vsub.f32 %v3158_v13, %v1548_v45  ;;  %v3228_v34 = vadd.f32 %v3078_v58, %v3153_v5 }
 0x3b9   : > { %v2654_v60 = vpop.eup %2653  ;;  %v1849_v23 = vmul.f32 %v3148_v38, %v1769_v47  ;;  %v1770_v42 = vmul.f32 %v2652_v15, %v3174_v54  ;;  %v1680_v16 = vadd.f32 %v1679_v40, %v1678_v30  ;;  %v1711_v43 = vadd.f32 %v1710_v3, %v1709_v18  ;;  %v3239_v38 = vpop.permute.xlu0 %1815 }
 0x3ba   : > { %v3232_v2 = vpop.eup %2655  ;;  %v1847_v29 = vmul.f32 %v3176_v12, %v1767_v35  ;;  %v1768_v22 = vmul.f32 %v2654_v60, %v3180_v62  ;;  %v1625_v25 = vmul.f32 1.442695, %v1600_v28  ;;  %v3236_v13 = vmax.f32 %v1579_v39, %v1580_v24 }
 0x3bb   : > { %v1877_v5 = vsel %vm747_vm3, %v1849_v23, 0.0  ;;  %v1850_v52 = vmul.f32 %v1806_v19, %v1770_v42  ;;  %2665 = vrcp.f32 %v1680_v16  ;;  %v1712_v53 = vrot.slane %v1711_v43, 2 }
 0x3bc   : > { %v1878_v54 = vrot.slane %v1877_v5, 4  ;;  %v1863_v0 = vsel %vm747_vm3, %v1847_v29, 0.0  ;;  %v1848_v1 = vmul.f32 %v3189_v63, %v1768_v22  ;;  %v1695_v12 = vsel %vm747_vm3, %v3232_v2, 0.0 }
 0x3bd   : > { %v1864_v20 = vrot.slane %v1863_v0, 4  ;;  %v1884_v62 = vsel %vm747_vm3, %v1850_v52, 0.0  ;;  %v1713_v4 = vadd.f32 %v1712_v53, %v1711_v43  ;;  %v1696_v6 = vrot.slane %v1695_v12, 4  ;;  %v1814_v35 = vpop.permute.xlu0 %1813 }
 0x3be   : > { %v2658_v7 = vpop.eup %2657  ;;  %v1879_v57 = vadd.f32 %v1878_v54, %v1877_v5  ;;  %v1885_v48 = vrot.slane %v1884_v62, 4  ;;  %v1870_v51 = vsel %vm747_vm3, %v1848_v1, 0.0  ;;  %2667 = vpow2.f32 %v1625_v25 }
 0x3bf   : > { %v2660_v32 = vpop.eup %2659  ;;  %v1865_v11 = vadd.f32 %v1864_v20, %v1863_v0  ;;  %v1871_v17 = vrot.slane %v1870_v51, 4  ;;  %v1773_v39 = vmul.f32 %v2658_v7, %v3187_v61  ;;  %v1714_v63 = vrot.slane %v1713_v4, 1 }
 0x3c0   : > { %v2662_v30 = vpop.eup %2661  ;;  %v1880_v36 = vrot.slane %v1879_v57, 2  ;;  %v1886_v18 = vadd.f32 %v1885_v48, %v1884_v62  ;;  %v1771_v45 = vmul.f32 %v2660_v32, %v3192_v33  ;;  %v3249_v24 = vadd.f32 %v1696_v6, %v1695_v12 }
 0x3c1   : > { %v1866_v26 = vrot.slane %v1865_v11, 2  ;;  %v1872_v47 = vadd.f32 %v1871_v17, %v1870_v51  ;;  %v1853_v40 = vmul.f32 %v3202_v41, %v1773_v39  ;;  %v1774_v3 = vmul.f32 %v2662_v30, %v3196_v8 }
 0x3c2   : > { %v3253_v15 = vpop.eup %2663  ;;  %v1881_v28 = vadd.f32 %v1880_v36, %v1879_v57  ;;  %v1887_v60 = vrot.slane %v1886_v18, 2  ;;  %v1851_v61 = vmul.f32 %v3208_v44, %v1771_v45  ;;  %v1715_v23 = vadd.f32 %v1714_v63, %v1713_v4 }
 0x3c3   : > { %v1867_v42 = vadd.f32 %v1866_v26, %v1865_v11  ;;  %v1873_v16 = vrot.slane %v1872_v47, 2  ;;  %v1905_v33 = vsel %vm747_vm3, %v1853_v40, 0.0  ;;  %v1854_v43 = vmul.f32 %v1814_v35, %v1774_v3 }
 0x3c4   : > { %v1882_v19 = vrot.slane %v1881_v28, 1  ;;  %v1888_v29 = vadd.f32 %v1887_v60, %v1886_v18  ;;  %v1906_v22 = vrot.slane %v1905_v33, 4  ;;  %v1891_v41 = vsel %vm747_vm3, %v1851_v61, 0.0 }
 0x3c5   : > { %v2666_v8 = vpop.eup %2665  ;;  %v1868_v25 = vrot.slane %v1867_v42, 1  ;;  %v1874_v5 = vadd.f32 %v1873_v16, %v1872_v47  ;;  %v1892_v52 = vrot.slane %v1891_v41, 4  ;;  %v1912_v53 = vsel %vm747_vm3, %v1854_v43, 0.0 }
 0x3c6   : > { %v1883_v44 = vadd.f32 %v1882_v19, %v1881_v28  ;;  %v1889_v54 = vrot.slane %v1888_v29, 1  ;;  %v1907_v0 = vadd.f32 %v1906_v22, %v1905_v33  ;;  %v1913_v1 = vrot.slane %v1912_v53, 4 }
 0x3c7   : > { %v1869_v12 = vadd.f32 %v1868_v25, %v1867_v42  ;;  %v1875_v20 = vrot.slane %v1874_v5, 1  ;;  %v1893_v62 = vadd.f32 %v1892_v52, %v1891_v41  ;;  %v1772_v4 = vmul.f32 %v2666_v8, %v3204_v31 }
 0x3c8   : > { %v3260_v6 = vpop.eup %2667  ;;  %v2009_v7 = vadd.f32 %v1978_v49, %v1883_v44  ;;  %v1890_v57 = vadd.f32 %v1889_v54, %v1888_v29  ;;  %v1908_v48 = vrot.slane %v1907_v0, 2  ;;  %v1914_v51 = vadd.f32 %v1913_v1, %v1912_v53 }
 0x3c9   : > { %v2007_v32 = vadd.f32 %v1869_v12, %v3104_v37  ;;  %v1876_v11 = vadd.f32 %v1875_v20, %v1874_v5  ;;  %v1894_v17 = vrot.slane %v1893_v62, 2  ;;  %v1852_v39 = vmul.f32 %v3218_v59, %v1772_v4 }
 0x3ca   : > { %v2042_v63 = vrot.slane %v2009_v7, 6  ;;  %v2089_v30 = vmul.f32 %v2009_v7, %v2009_v7  ;;  %v2010_v36 = vadd.f32 %v1979_v56, %v1890_v57  ;;  %v1909_v31 = vadd.f32 %v1908_v48, %v1907_v0 }
 0x3cb   : > { %v2087_v18 = vmul.f32 %v2007_v32, %v2007_v32  ;;  %v2008_v49 = vadd.f32 %v1977_v46, %v1876_v11  ;;  %v1895_v45 = vadd.f32 %v1894_v17, %v1893_v62  ;;  %v1915_v26 = vrot.slane %v1914_v51, 2 }
 0x3cc   : > { %v2121_v47 = vrot.slane %v2089_v30, 6  ;;  %v2045_v40 = vrot.slane %v2010_v36, 5  ;;  %v2090_v3 = vmul.f32 %v2010_v36, %v2010_v36  ;;  %v1910_v35 = vrot.slane %v1909_v31, 1 }
 0x3cd   : > { %v2039_v28 = vrot.slane %v2008_v49, 7  ;;  %v2088_v60 = vmul.f32 %v2008_v49, %v2008_v49  ;;  %v1896_v59 = vrot.slane %v1895_v45, 1  ;;  %v1916_v61 = vadd.f32 %v1915_v26, %v1914_v51 }
 0x3ce   : > { %v2123_v42 = vrot.slane %v2090_v3, 5  ;;  %v1911_v16 = vadd.f32 %v1910_v35, %v1909_v31  ;;  %v1898_v56 = vsel %vm747_vm3, %v1852_v39, 0.0  ;;  %2669 = vrcp.f32 %v1715_v23  ;;  %v1820_v35 = vpop.permute.xlu1 %1819 }
 0x3cf   : > { %v2041_v33 = vsel %vm2040_vm4, %v2039_v28, %v2007_v32  ;;  %v2119_v43 = vrot.slane %v2088_v60, 7  ;;  %v1897_v19 = vadd.f32 %v1896_v59, %v1895_v45  ;;  %v1917_v46 = vrot.slane %v1916_v61, 1 }
 0x3d0   : > { %v2044_v29 = vsel %vm2043_vm5, %v2042_v63, %v2041_v33  ;;  %v3275_v22 = vadd.f32 %v1982_v55, %v1911_v16  ;;  %v1899_v41 = vrot.slane %v1898_v56, 4  ;;  %v1698_v8 = vrot.slane %v3249_v24, 2 }
 0x3d1   : > { %v2120_v25 = vsel %vm2040_vm4, %v2119_v43, %v2087_v18  ;;  %v2011_v5 = vadd.f32 %v1980_v50, %v1897_v19  ;;  %v2047_v23 = vsel %vm2046_vm6, %v2045_v40, %v2044_v29  ;;  %v1918_v52 = vadd.f32 %v1917_v46, %v1916_v61 }
 0x3d2   : > { %v2122_v53 = vsel %vm2043_vm5, %v2121_v47, %v2120_v25  ;;  %v1900_v44 = vadd.f32 %v1899_v41, %v1898_v56  ;;  %v1981_v54 = vrot.slane %v3104_v37, 5  ;;  %v1582_v0 = vrot.slane %v3236_v13, 1 }
 0x3d3   : > { %v2048_v55 = vrot.slane %v2011_v5, 4  ;;  %v2091_v1 = vmul.f32 %v2011_v5, %v2011_v5  ;;  %v2124_v12 = vsel %vm2046_vm6, %v2123_v42, %v2122_v53  ;;  %v3288_v20 = vadd.f32 %v1983_v10, %v1918_v52 }
 0x3d4   : > { %v1901_v62 = vrot.slane %v1900_v44, 2  ;;  %v1699_v50 = vadd.f32 %v1698_v8, %v3249_v24  ;;  %v1716_v4 = vsel %vm747_vm3, %v3253_v15, 0.0  ;;  %v1563_v7 = vsel %vm747_vm3, %v3228_v34, -inf }
 0x3d5   : > { %v2054_v57 = vrot.slane %v3275_v22, 2  ;;  %v3298_v48 = vmul.f32 %v3275_v22, %v3275_v22  ;;  %v2050_v51 = vsel %vm2049_vm7, %v2048_v55, %v2047_v23  ;;  %v2125_v37 = vrot.slane %v2091_v1, 4 }
 0x3d6   : > { %v1902_v10 = vadd.f32 %v1901_v62, %v1900_v44  ;;  %v1700_v32 = vrot.slane %v1699_v50, 1  ;;  %v1717_v24 = vrot.slane %v1716_v4, 4  ;;  %v1702_v11 = vsel %vm747_vm3, %v3260_v6, 0.0 }
 0x3d7   : > { %v2126_v17 = vsel %vm2049_vm7, %v2125_v37, %v2124_v12  ;;  %v2094_v39 = vmul.f32 %v3288_v20, %v3288_v20  ;;  %v1703_v63 = vrot.slane %v1702_v11, 4  ;;  %v1583_v30 = vmax.f32 %v3236_v13, %v1582_v0 }
 0x3d8   : > { %v2670_v36 = vpop.eup %2669  ;;  %v1903_v31 = vrot.slane %v1902_v10, 1  ;;  %v1701_v18 = vadd.f32 %v1700_v32, %v1699_v50  ;;  %v1718_v49 = vadd.f32 %v1717_v24, %v1716_v4  ;;  %v1564_v45 = vrot.slane %v1563_v7, 4 }
 0x3d9   : > { %v1777_v26 = vmul.f32 %v2670_v36, %v3214_v27  ;;  %v1704_v47 = vadd.f32 %v1703_v63, %v1702_v11  ;;  %v1605_v40 = vsub.f32 %v3167_v21, %v1583_v30  ;;  %v3311_v3 = vadd.f32 %v3155_v9, %v3078_v58 }
 0x3da   : > { %v1904_v28 = vadd.f32 %v1903_v31, %v1902_v10  ;;  %2671 = vrcp.f32 %v1701_v18  ;;  %v1719_v60 = vrot.slane %v1718_v49, 2  ;;  %v1565_v59 = vmax.f32 %v1563_v7, %v1564_v45  ;;  %v1822_v31 = vpop.permute.xlu1 %1821 }
 0x3db   : > { %v1857_v13 = vmul.f32 %v1820_v35, %v1777_v26  ;;  %v1705_v61 = vrot.slane %v1704_v47, 2  ;;  %v1635_v42 = vmul.f32 1.442695, %v1605_v40  ;;  %v1584_v16 = vsel %vm747_vm3, %v3311_v3, -inf }
 0x3dc   : > { %v2012_v56 = vadd.f32 %v1981_v54, %v1904_v28  ;;  %v1720_v27 = vadd.f32 %v1719_v60, %v1718_v49  ;;  %v1566_v33 = vrot.slane %v1565_v59, 2  ;;  %v1585_v21 = vrot.slane %v1584_v16, 4 }
 0x3dd   : > { %v2129_v43 = vrot.slane %v3298_v48, 2  ;;  %v2057_v9 = vrot.slane %v3288_v20, 1  ;;  %v1706_v19 = vadd.f32 %v1705_v61, %v1704_v47  ;;  %2673 = vpow2.f32 %v1635_v42 }
 0x3de   : > { %v2131_v46 = vrot.slane %v2094_v39, 1  ;;  %v2051_v29 = vrot.slane %v2012_v56, 3  ;;  %v2092_v22 = vmul.f32 %v2012_v56, %v2012_v56  ;;  %v1721_v41 = vrot.slane %v1720_v27, 1  ;;  %v1818_v56 = vpop.permute.xlu1 %1817 }
 0x3df   : > { %v1933_v8 = vsel %vm747_vm3, %v1857_v13, 0.0  ;;  %v1707_v25 = vrot.slane %v1706_v19, 1  ;;  %v1567_v5 = vmax.f32 %v1565_v59, %v1566_v33  ;;  %v1586_v23 = vmax.f32 %v1584_v16, %v1585_v21 }
 0x3e0   : > { %v2053_v52 = vsel %vm2052_vm8, %v2051_v29, %v2050_v51  ;;  %v2127_v53 = vrot.slane %v2092_v22, 3  ;;  %v1722_v44 = vadd.f32 %v1721_v41, %v1720_v27  ;;  %v3328_v54 = vadd.f32 %v3078_v58, %v3160_v14 }
 0x3e1   : > { %v2056_v0 = vsel %vm2055_vm9, %v2054_v57, %v2053_v52  ;;  %v1708_v55 = vadd.f32 %v1707_v25, %v1706_v19  ;;  %v1568_v1 = vrot.slane %v1567_v5, 1  ;;  %v1587_v12 = vrot.slane %v1586_v23, 2 }
 0x3e2   : > { %v3332_v20 = vsel %vm2058_vm10, %v2057_v9, %v2056_v0  ;;  %v2128_v62 = vsel %vm2052_vm8, %v2127_v53, %v2126_v17  ;;  %v1934_v50 = vrot.slane %v1933_v8, 4  ;;  %2675 = vrcp.f32 %v1722_v44 }
 0x3e3   : > { %2076 = vst.msk [vmem:[%s3323_s11] sm:$0xff] %vm747_vm3, %v3332_v20  ;;  %v2130_v4 = vsel %vm2055_vm9, %v2129_v43, %v2128_v62  ;;  %2677 = vrcp.f32 %v1708_v55  ;;  %v1569_v58 = vmax.f32 %v1567_v5, %v1568_v1  ;;  %v1588_v57 = vmax.f32 %v1586_v23, %v1587_v12 }
 0x3e4   : > { %v2672_v14 = vpop.eup %2671  ;;  %v3340_v7 = vsel %vm2058_vm10, %v2131_v46, %v2130_v4  ;;  %v1570_v48 = vsel %vm747_vm3, %v3328_v54, -inf  ;;  %v1935_v32 = vadd.f32 %v1934_v50, %v1933_v8  ;;  %v3361_v8 = vld [vmem:[%s3090_s12 + $0x8] sm:$0xff] }
 0x3e5   : > { %v1775_v51 = vmul.f32 %v2672_v14, %v3232_v2  ;;  %v1603_v37 = vsub.f32 %v3228_v34, %v1569_v58  ;;  %v1571_v10 = vrot.slane %v1570_v48, 4  ;;  %v1589_v24 = vrot.slane %v1588_v57, 1 }
 0x3e6   : > { %v1936_v34 = vrot.slane %v1935_v32, 2 }
 0x3e7   : > { %v3346_v11 = vpop.eup %2673  ;;  %v1855_v17 = vmul.f32 %v3239_v38, %v1775_v51  ;;  %v1631_v39 = vmul.f32 1.442695, %v1603_v37  ;;  %v1572_v63 = vmax.f32 %v1570_v48, %v1571_v10  ;;  %v1590_v36 = vmax.f32 %v1588_v57, %v1589_v24 }
 0x3e8   : > { %v1737_v30 = vsel %vm747_vm3, %v3346_v11, 0.0  ;;  %v1937_v42 = vadd.f32 %v1936_v34, %v1935_v32  ;;  %v1986_v10 = vrot.slane %v3361_v8, 3 }
 0x3e9   : > { %v1919_v18 = vsel %vm747_vm3, %v1855_v17, 0.0  ;;  %v1738_v49 = vrot.slane %v1737_v30, 4  ;;  %2679 = vpow2.f32 %v1631_v39  ;;  %v1573_v2 = vrot.slane %v1572_v63, 2 }
 0x3ea   : > { %v1920_v45 = vrot.slane %v1919_v18, 4  ;;  %v1606_v26 = vsub.f32 %v3311_v3, %v1590_v36  ;;  %v1938_v29 = vrot.slane %v1937_v42, 1  ;;  %v1984_v39 = vrot.slane %v3361_v8, 1 }
 0x3eb   : > { %v1739_v47 = vadd.f32 %v1738_v49, %v1737_v30  ;;  %v1574_v40 = vmax.f32 %v1572_v63, %v1573_v2 }
 0x3ec   : > { %v2676_v35 = vpop.eup %2675  ;;  %v1921_v38 = vadd.f32 %v1920_v45, %v1919_v18  ;;  %v1637_v28 = vmul.f32 1.442695, %v1606_v26  ;;  %v1939_v55 = vadd.f32 %v1938_v29, %v1937_v42 }
 0x3ed   : > { %v2678_v60 = vpop.eup %2677  ;;  %v1778_v59 = vmul.f32 %v2676_v35, %v3253_v15  ;;  %v1740_v13 = vrot.slane %v1739_v47, 2  ;;  %v1575_v61 = vrot.slane %v1574_v40, 1  ;;  %v1828_v35 = vpop.permute.xlu1 %1827 }
 0x3ee   : > { %v1776_v16 = vmul.f32 %v2678_v60, %v3260_v6  ;;  %2681 = vpow2.f32 %v1637_v28  ;;  %v1922_v27 = vrot.slane %v1921_v38, 2 }
 0x3ef   : > { %v1858_v33 = vmul.f32 %v1822_v31, %v1778_v59  ;;  %v1741_v21 = vadd.f32 %v1740_v13, %v1739_v47  ;;  %v1576_v3 = vmax.f32 %v1574_v40, %v1575_v61 }
 0x3f0   : > { %v1856_v43 = vmul.f32 %v1818_v56, %v1776_v16  ;;  %v1923_v6 = vadd.f32 %v1922_v27, %v1921_v38 }
 0x3f1   : > { %v1940_v9 = vsel %vm747_vm3, %v1858_v33, 0.0  ;;  %v1742_v19 = vrot.slane %v1741_v21, 1  ;;  %v1604_v46 = vsub.f32 %v3328_v54, %v1576_v3  ;;  %v1985_v54 = vrot.slane %v3361_v8, 2 }
 0x3f2   : > { %v1941_v15 = vrot.slane %v1940_v9, 4  ;;  %v1926_v22 = vsel %vm747_vm3, %v1856_v43, 0.0  ;;  %v1924_v12 = vrot.slane %v1923_v6, 1 }
 0x3f3   : > { %v3358_v41 = vpop.eup %2679  ;;  %v1927_v25 = vrot.slane %v1926_v22, 4  ;;  %v1743_v5 = vadd.f32 %v1742_v19, %v1741_v21  ;;  %v1633_v23 = vmul.f32 1.442695, %v1604_v46  ;;  %v2017_v51 = vadd.f32 %v1985_v54, %v1939_v55 }
 0x3f4   : > { %v1942_v52 = vadd.f32 %v1941_v15, %v1940_v9  ;;  %v1723_v53 = vsel %vm747_vm3, %v3358_v41, 0.0  ;;  %v1925_v24 = vadd.f32 %v1924_v12, %v1923_v6 }
 0x3f5   : > { %v1928_v44 = vadd.f32 %v1927_v25, %v1926_v22  ;;  %v1724_v0 = vrot.slane %v1723_v53, 4  ;;  %2683 = vpow2.f32 %v1633_v23  ;;  %v2097_v49 = vmul.f32 %v2017_v51, %v2017_v51  ;;  %v1824_v25 = vpop.permute.xlu1 %1823 }
 0x3f6   : > { %v1943_v1 = vrot.slane %v1942_v52, 2  ;;  %2685 = vrcp.f32 %v1743_v5  ;;  %v2015_v45 = vadd.f32 %v1925_v24, %v3361_v8  ;;  %v2062_v42 = vrot.slane %v2017_v51, 6 }
 0x3f7   : > { %v1929_v62 = vrot.slane %v1928_v44, 2  ;;  %v1725_v50 = vadd.f32 %v1724_v0, %v1723_v53  ;;  %v2135_v16 = vrot.slane %v2097_v49, 6 }
 0x3f8   : > { %v3366_v4 = vpop.eup %2681  ;;  %v1944_v58 = vadd.f32 %v1943_v1, %v1942_v52  ;;  %v2095_v33 = vmul.f32 %v2015_v45, %v2015_v45 }
 0x3f9   : > { %v1930_v14 = vadd.f32 %v1929_v62, %v1928_v44  ;;  %v1726_v57 = vrot.slane %v1725_v50, 2  ;;  %v1744_v48 = vsel %vm747_vm3, %v3366_v4, 0.0  ;;  %v1826_v54 = vpop.permute.xlu1 %1825 }
 0x3fa   : > { %v1945_v37 = vrot.slane %v1944_v58, 1  ;;  %v1745_v32 = vrot.slane %v1744_v48, 4 }
 0x3fb   : > { %v1931_v17 = vrot.slane %v1930_v14, 1  ;;  %v1727_v63 = vadd.f32 %v1726_v57, %v1725_v50 }
 0x3fc   : > { %v1946_v30 = vadd.f32 %v1945_v37, %v1944_v58  ;;  %v1746_v36 = vadd.f32 %v1745_v32, %v1744_v48 }
 0x3fd   : > { %v1932_v31 = vadd.f32 %v1931_v17, %v1930_v14  ;;  %v1728_v18 = vrot.slane %v1727_v63, 1  ;;  %v1830_v51 = vpop.permute.xlu1 %1829 }
 0x3fe   : > { %v2018_v2 = vadd.f32 %v1986_v10, %v1946_v30  ;;  %v1747_v34 = vrot.slane %v1746_v36, 2 }
 0x3ff   : > { %v2016_v26 = vadd.f32 %v1984_v39, %v1932_v31  ;;  %v1729_v47 = vadd.f32 %v1728_v18, %v1727_v63  ;;  %v2684_v40 = vpop.eup %2683  ;;  %v1987_v18 = vrot.slane %v3361_v8, 4 }
 0x400   : > { %v2098_v38 = vmul.f32 %v2018_v2, %v2018_v2  ;;  %v1748_v28 = vadd.f32 %v1747_v34, %v1746_v36  ;;  %v2686_v60 = vpop.eup %2685  ;;  %v1730_v61 = vsel %vm747_vm3, %v2684_v40, 0.0  ;;  %v2064_v21 = vrot.slane %v2018_v2, 5 }
 0x401   : > { %v2060_v59 = vrot.slane %v2016_v26, 7  ;;  %v2096_v13 = vmul.f32 %v2016_v26, %v2016_v26  ;;  %2687 = vrcp.f32 %v1729_v47  ;;  %v1731_v27 = vrot.slane %v1730_v61, 4 }
 0x402   : > { %v1749_v56 = vrot.slane %v1748_v28, 1  ;;  %v1781_v19 = vmul.f32 %v2686_v60, %v3346_v11  ;;  %v2137_v15 = vrot.slane %v2098_v38, 5 }
 0x403   : > { %v2061_v3 = vsel %vm2040_vm4, %v2060_v59, %v2015_v45  ;;  %v2133_v43 = vrot.slane %v2096_v13, 7  ;;  %v1732_v29 = vadd.f32 %v1731_v27, %v1730_v61 }
 0x404   : > { %v2063_v9 = vsel %vm2043_vm5, %v2062_v42, %v2061_v3  ;;  %v1750_v46 = vadd.f32 %v1749_v56, %v1748_v28  ;;  %v1861_v53 = vmul.f32 %v1828_v35, %v1781_v19  ;;  %v1990_v3 = vrot.slane %v3361_v8, 7 }
 0x405   : > { %v2134_v22 = vsel %vm2040_vm4, %v2133_v43, %v2095_v33  ;;  %v2065_v6 = vsel %vm2046_vm6, %v2064_v21, %v2063_v9  ;;  %v1733_v23 = vrot.slane %v1732_v29, 2  ;;  %v1988_v19 = vrot.slane %v3361_v8, 5 }
 0x406   : > { %v2136_v5 = vsel %vm2043_vm5, %v2135_v16, %v2134_v22  ;;  %2689 = vrcp.f32 %v1750_v46  ;;  %v1961_v11 = vsel %vm747_vm3, %v1861_v53, 0.0 }
 0x407   : > { %v2138_v52 = vsel %vm2046_vm6, %v2137_v15, %v2136_v5  ;;  %v1734_v44 = vadd.f32 %v1733_v23, %v1732_v29  ;;  %v1962_v50 = vrot.slane %v1961_v11, 4 }
 0x409   : > { %v1735_v0 = vrot.slane %v1734_v44, 1  ;;  %v1963_v37 = vadd.f32 %v1962_v50, %v1961_v11 }
 0x40b   : > { %v2688_v55 = vpop.eup %2687  ;;  %v1736_v12 = vadd.f32 %v1735_v0, %v1734_v44  ;;  %v1964_v63 = vrot.slane %v1963_v37, 2 }
 0x40c   : > { %v1779_v1 = vmul.f32 %v2688_v55, %v3358_v41 }
 0x40d   : > { %2691 = vrcp.f32 %v1736_v12  ;;  %v1965_v34 = vadd.f32 %v1964_v63, %v1963_v37  ;;  %v2078_v12 = vsel %vm747_vm3, %v3332_v20, 0.0 }
 0x40e   : > { %v1859_v62 = vmul.f32 %v1824_v25, %v1779_v1 }
 0x40f   : > { %v1966_v28 = vrot.slane %v1965_v34, 1 }
 0x410   : > { %v2690_v58 = vpop.eup %2689  ;;  %v1947_v14 = vsel %vm747_vm3, %v1859_v62, 0.0 }
 0x411   : > { %v1948_v57 = vrot.slane %v1947_v14, 4  ;;  %v1782_v48 = vmul.f32 %v2690_v58, %v3366_v4  ;;  %v1967_v27 = vadd.f32 %v1966_v28, %v1965_v34 }
 0x413   : > { %v1949_v10 = vadd.f32 %v1948_v57, %v1947_v14  ;;  %v1862_v32 = vmul.f32 %v1830_v51, %v1782_v48  ;;  %v2149_v57 = vsel %vm747_vm3, %v3340_v7, 0.0 }
 0x415   : > { %v1950_v24 = vrot.slane %v1949_v10, 2  ;;  %v1968_v17 = vsel %vm747_vm3, %v1862_v32, 0.0 }
 0x416   : > { %v1969_v39 = vrot.slane %v1968_v17, 4 }
 0x417   : > { %v1951_v41 = vadd.f32 %v1950_v24, %v1949_v10  ;;  %v2692_v30 = vpop.eup %2691 }
 0x418   : > { %v1970_v36 = vadd.f32 %v1969_v39, %v1968_v17  ;;  %v1780_v49 = vmul.f32 %v2692_v30, %v2684_v40  ;;  %v1989_v40 = vrot.slane %v3361_v8, 6 }
 0x419   : > { %v1952_v31 = vrot.slane %v1951_v41, 1 }
 0x41a   : > { %v1971_v2 = vrot.slane %v1970_v36, 2  ;;  %v1860_v4 = vmul.f32 %v1826_v54, %v1780_v49  ;;  %v2021_v46 = vadd.f32 %v1989_v40, %v1967_v27 }
 0x41b   : > { %v1953_v45 = vadd.f32 %v1952_v31, %v1951_v41 }
 0x41c   : > { %v1972_v26 = vadd.f32 %v1971_v2, %v1970_v36  ;;  %v1954_v35 = vsel %vm747_vm3, %v1860_v4, 0.0  ;;  %v2070_v53 = vrot.slane %v2021_v46, 2 }
 0x41d   : > { %v2019_v47 = vadd.f32 %v1987_v18, %v1953_v45  ;;  %v1955_v38 = vrot.slane %v1954_v35, 4 }
 0x41e   : > { %v1973_v13 = vrot.slane %v1972_v26, 1 }
 0x41f   : > { %v2066_v60 = vrot.slane %v2019_v47, 4  ;;  %v2099_v59 = vmul.f32 %v2019_v47, %v2019_v47  ;;  %v1956_v61 = vadd.f32 %v1955_v38, %v1954_v35 }
 0x420   : > { %v1974_v21 = vadd.f32 %v1973_v13, %v1972_v26 }
 0x421   : > { %v2067_v42 = vsel %vm2049_vm7, %v2066_v60, %v2065_v6  ;;  %v2139_v16 = vrot.slane %v2099_v59, 4  ;;  %v1957_v56 = vrot.slane %v1956_v61, 2  ;;  %v2101_v6 = vmul.f32 %v2021_v46, %v2021_v46 }
 0x422   : > { %v2022_v29 = vadd.f32 %v1990_v3, %v1974_v21 }
 0x423   : > { %v2140_v33 = vsel %vm2049_vm7, %v2139_v16, %v2138_v52  ;;  %v1958_v43 = vadd.f32 %v1957_v56, %v1956_v61  ;;  %v2143_v55 = vrot.slane %v2101_v6, 2 }
 0x424   : > { %v2102_v25 = vmul.f32 %v2022_v29, %v2022_v29  ;;  %v2072_v44 = vrot.slane %v2022_v29, 1 }
 0x425   : > { %v1959_v9 = vrot.slane %v1958_v43, 1 }
 0x426   : > { %v2145_v11 = vrot.slane %v2102_v25, 1 }
 0x427   : > { %v1960_v15 = vadd.f32 %v1959_v9, %v1958_v43 }
 0x429   : > { %v2020_v22 = vadd.f32 %v1988_v19, %v1960_v15 }
 0x42b   : > { %v2068_v5 = vrot.slane %v2020_v22, 3  ;;  %v2100_v23 = vmul.f32 %v2020_v22, %v2020_v22 }
 0x42d   : > { %v2069_v52 = vsel %vm2052_vm8, %v2068_v5, %v2067_v42  ;;  %v2141_v0 = vrot.slane %v2100_v23, 3 }
 0x42e   : > { %v2071_v54 = vsel %vm2055_vm9, %v2070_v53, %v2069_v52 }
 0x42f   : > { %v2073_v8 = vsel %vm2058_vm10, %v2072_v44, %v2071_v54  ;;  %v2142_v1 = vsel %vm2052_vm8, %v2141_v0, %v2140_v33 }
 0x430   : > { %2077 = vst.msk [vmem:[%s3323_s11 + $0x8] sm:$0xff] %vm747_vm3, %v2073_v8  ;;  %v2079_v62 = vsel %vm747_vm3, %v2073_v8, 0.0  ;;  %v2144_v50 = vsel %vm2055_vm9, %v2143_v55, %v2142_v1 }
 0x431   : > { %v2080_v58 = vadd.f32 %v2079_v62, %v2078_v12  ;;  %v2146_v14 = vsel %vm2058_vm10, %v2145_v11, %v2144_v50 }
 0x432   : > { %v2150_v48 = vsel %vm747_vm3, %v2146_v14, 0.0 }
 0x433   : > { %v2081_v51 = vrot.slane %v2080_v58, 4  ;;  %v2151_v37 = vadd.f32 %v2150_v48, %v2149_v57 }
 0x435   : > { %v2082_v10 = vadd.f32 %v2081_v51, %v2080_v58  ;;  %v2152_v32 = vrot.slane %v2151_v37, 4 }
 0x437   : > { %v2083_v20 = vrot.slane %v2082_v10, 2  ;;  %v2153_v24 = vadd.f32 %v2152_v32, %v2151_v37 }
 0x439   : > { %v2084_v17 = vadd.f32 %v2083_v20, %v2082_v10  ;;  %v2154_v39 = vrot.slane %v2153_v24, 2 }
 0x43b   : > { %v2155_v63 = vadd.f32 %v2154_v39, %v2153_v24  ;;  %v2085_v41 = vrot.slane %v2084_v17, 1 }
 0x43d   : > { %v2156_v30 = vrot.slane %v2155_v63, 1  ;;  %v2086_v7 = vadd.f32 %v2085_v41, %v2084_v17 }
 0x43f   : > { %v2157_v36 = vadd.f32 %v2156_v30, %v2155_v63 }
 0x441   : > { %v2159_v31 = vrot.slane %v2157_v36, 7 }
 0x443   : > { %v2161_v18 = vsel %vm598_vm0, %v2086_v7, %v2159_v31 }
 0x444   : > { %2163 = vst.msk [vmem:[%s471_s18] sm:$0x3] %vm2162_vm11, %v2161_v18 }
 0x445 PF: > { %s19_s29 = sadd.s32 1, %s2715_s29   ;;  %s3430_s27 = smov %s2711_s28 }
 0x446   : > { %p16_p5 = scmp.ge.s32.totalorder %s19_s29, 4   ;;  %s3431_s28 = smov %s3433_s30 }
 0x448   :  { %18 = sbr.rel (!%p16_p5) target bundleno = 2 (0x2), region = 101 }

// kernel: transformer_block.5
= control target key start
LH: loop header
LB: loop body
LE: loop exit
PB: predicated region body
PF: predicated region fallthrough
CT: control target
= control target key end

     0   :  { %s70_s0 = inlined_call_operand.vmem [shape: f32[8,128], index: 0, kind: input, shape index: {}]   ;;  %s71_s1 = inlined_call_operand.vmem [shape: f32[1,128], index: 1, kind: input, shape index: {}]   ;;  %s72_s2 = inlined_call_operand.vmem [shape: f32[1,128], index: 2, kind: input, shape index: {}]   ;;  %s73_s3 = inlined_call_operand.vmem [shape: f32[8,128], index: 3, kind: output, shape index: {}]  }
   0x1   :  { %v14_v0 = vld [vmem:[%s70_s0] sm:$0xff] }
   0x2   :  { %v36_v1 = vld [vmem:[%s71_s1] ss:$0 sm:$0xff] }
   0x3   :  { %v37_v2 = vld [vmem:[%s72_s2] ss:$0 sm:$0xff]  ;;  %v22_v3 = vmul.f32 %v36_v1, %v14_v0 }
   0x5   :  { %v30_v4 = vadd.f32 %v37_v2, %v22_v3 }
   0x7   :  { %31 = vst [vmem:[%s73_s3] sm:$0xff] %v30_v4 }

</bundles_post_ra>
